<compile_context>
chip_gen: v6e
topology: v6e:2x2x1
jax: 0.10.0
libtpu: 0.0.40
codegen_flags: <defaults>
</compile_context>

<pallas_src>
from functools import partial

import jax
import jax.numpy as jnp
from jax.experimental import pallas as pl
from jax.experimental.pallas import tpu as pltpu


def _round_up(n, m):
    return ((n + m - 1) // m) * m


# ----------------------------------------------------------------------------
# Kernel: one batch tile through the whole encoder+decoder MLP.
# Activations arrive/leave as bf16; matmuls are bf16 x bf16 with f32
# accumulation; bias / ReLU / sigmoid run in f32.
# ----------------------------------------------------------------------------
def _ae_kernel(x_ref,
               w1_ref, b1_ref,   # encoder layer 1: Dp  -> Hp
               w2_ref, b2_ref,   # encoder layer 2: Hp  -> Zp
               w3_ref, b3_ref,   # decoder layer 1: Zp  -> Hp
               w4_ref, b4_ref,   # decoder layer 2: Hp  -> Dp
               out_ref,
               *, n_sub):
    # Weights / biases are VMEM-resident (constant index maps); hoist the loads.
    w1 = w1_ref[...]
    w2 = w2_ref[...]
    w3 = w3_ref[...]
    w4 = w4_ref[...]
    b1 = b1_ref[...]
    b2 = b2_ref[...]
    b3 = b3_ref[...]
    b4 = b4_ref[...]

    rows = x_ref.shape[0]
    sub = rows // n_sub

    # Static unrolled loop over independent row sub-tiles: lets the scheduler
    # overlap the MXU chain of sub-tile s+1 with the VPU/EUP tail of sub-tile s.
    for s in range(n_sub):
        rs = pl.ds(s * sub, sub)                 # static, sublane-aligned
        x = x_ref[rs, :]                         # [sub, Dp] bf16

        # ---- Encoder ----
        h1 = jnp.dot(x, w1, preferred_element_type=jnp.float32)
        h1 = jnp.maximum(h1 + b1, 0.0)                                   # ReLU
        z = jnp.dot(h1.astype(jnp.bfloat16), w2,
                    preferred_element_type=jnp.float32) + b2             # [sub, Zp]

        # ---- Decoder ----
        h2 = jnp.dot(z.astype(jnp.bfloat16), w3,
                     preferred_element_type=jnp.float32)
        h2 = jnp.maximum(h2 + b3, 0.0)                                   # ReLU
        y = jnp.dot(h2.astype(jnp.bfloat16), w4,
                    preferred_element_type=jnp.float32) + b4             # [sub, Dp]

        # sigmoid(y) == 0.5 * tanh(0.5 * y) + 0.5  -> single EUP transcendental
        out_ref[rs, :] = (jnp.tanh(y * 0.5) * 0.5 + 0.5).astype(out_ref.dtype)


# ----------------------------------------------------------------------------
# Parameter packing: lane-pad all feature dims to multiples of 128 and cast
# weights to bf16 (done once, outside the hot path).
# ----------------------------------------------------------------------------
def pack_params(params, *, lane=128):
    def pad_w(w):
        fi, fo = w.shape
        fip, fop = _round_up(fi, lane), _round_up(fo, lane)
        return jnp.pad(w, ((0, fip - fi), (0, fop - fo))).astype(jnp.bfloat16)

    def pad_b(b):
        fo = b.shape[-1]
        fop = _round_up(fo, lane)
        return jnp.pad(b.reshape(1, fo).astype(jnp.float32),
                       ((0, 0), (0, fop - fo)))

    return {
        "w1": pad_w(params["w1"]), "b1": pad_b(params["b1"]),
        "w2": pad_w(params["w2"]), "b2": pad_b(params["b2"]),
        "w3": pad_w(params["w3"]), "b3": pad_b(params["b3"]),
        "w4": pad_w(params["w4"]), "b4": pad_b(params["b4"]),
    }


# ----------------------------------------------------------------------------
# Batch-tile choice.
# ----------------------------------------------------------------------------
def _choose_tb(B):
    # Tiny batches: one sublane-aligned tile.
    if B <= 16:
        return max(8, _round_up(B, 8))
    # Medium/large batches: ensure the grid has >= 2 steps so v7x's two
    # TensorCores both get work; cap the tile at 1024 rows (bf16 I/O keeps a
    # 1024 x 1024 in/out pair ~8 MiB double-buffered, well inside v5e's 16 MiB
    # default scoped VMEM).
    half = _round_up(pl.cdiv(B, 2), 128 if B >= 256 else 16)
    return min(1024, half)


# ----------------------------------------------------------------------------
# Forward wrapper.
# ----------------------------------------------------------------------------
def autoencoder_forward(x_nchw, packed, out_dtype=jnp.bfloat16):
    """x_nchw: [B, C, H, W]; packed: output of pack_params().

    out_dtype defaults to bf16 (halves output DMA).  Pass jnp.float32 to match
    the PyTorch module's output dtype exactly.
    """
    B, C, H, W = x_nchw.shape
    D = C * H * W

    w1, b1 = packed["w1"], packed["b1"]
    w2, b2 = packed["w2"], packed["b2"]
    w3, b3 = packed["w3"], packed["b3"]
    w4, b4 = packed["w4"], packed["b4"]
    Dp, Hp = w1.shape
    Zp = w2.shape[1]
    assert w4.shape[1] == Dp

    TB = _choose_tb(B)
    Bp = _round_up(B, TB)
    n_sub = 2 if TB >= 16 else 1

    # Skip the padded-copy round trip when it is a no-op; otherwise a single
    # fused cast+pad (no zeros + dynamic-update-slice).
    x_flat = x_nchw.reshape(B, D)
    needs_pad = (Bp != B) or (Dp != D)
    if needs_pad:
        x_in = jnp.pad(x_flat.astype(jnp.bfloat16), ((0, Bp - B), (0, Dp - D)))
    else:
        x_in = x_flat.astype(jnp.bfloat16)

    def act_spec(shape):
        return pl.BlockSpec(shape, lambda i: (i, 0))     # tile over batch

    def const_spec(shape):
        return pl.BlockSpec(shape, lambda i: (0, 0))     # weights: VMEM-resident

    # Advisory cost estimate so XLA schedules surrounding ops sensibly.
    flops = 2 * Bp * (Dp * Hp + Hp * Zp + Zp * Hp + Hp * Dp)
    weight_bytes = 2 * (Dp * Hp + Hp * Zp + Zp * Hp + Hp * Dp) \
        + 4 * (Hp + Zp + Hp + Dp)
    bytes_accessed = (Bp * Dp * 2                                  # bf16 input
                      + Bp * Dp * jnp.dtype(out_dtype).itemsize    # output
                      + weight_bytes)
    cost = pl.CostEstimate(flops=flops,
                           transcendentals=Bp * Dp,                # one tanh/elem
                           bytes_accessed=bytes_accessed)

    out_pad = pl.pallas_call(
        partial(_ae_kernel, n_sub=n_sub),
        out_shape=jax.ShapeDtypeStruct((Bp, Dp), out_dtype),
        grid=(Bp // TB,),
        in_specs=[
            act_spec((TB, Dp)),
            const_spec(w1.shape), const_spec(b1.shape),
            const_spec(w2.shape), const_spec(b2.shape),
            const_spec(w3.shape), const_spec(b3.shape),
            const_spec(w4.shape), const_spec(b4.shape),
        ],
        out_specs=act_spec((TB, Dp)),
        compiler_params=pltpu.CompilerParams(
            dimension_semantics=("parallel",),
        ),
        cost_estimate=cost,
    )(x_in, w1, b1, w2, b2, w3, b3, w4, b4)

    if needs_pad:
        return out_pad[:B, :D].reshape(B, C, H, W)
    return out_pad.reshape(B, C, H, W)


# ----------------------------------------------------------------------------
# Init + pure-JAX reference.
# ----------------------------------------------------------------------------
def init_params(key, D, H, zd):
    """Deterministic parameter init (uniform, PyTorch-Linear-like scaling)."""
    ks = jax.random.split(key, 8)

    def lin(kw, kb, fan_in, fan_out):
        bound = 1.0 / jnp.sqrt(jnp.float32(fan_in))
        w = jax.random.uniform(kw, (fan_in, fan_out), jnp.float32, -bound, bound)
        b = jax.random.uniform(kb, (1, fan_out), jnp.float32, -bound, bound)
        return w, b

    w1, b1 = lin(ks[0], ks[1], D, H)
    w2, b2 = lin(ks[2], ks[3], H, zd)
    w3, b3 = lin(ks[4], ks[5], zd, H)
    w4, b4 = lin(ks[6], ks[7], H, D)
    return {"w1": w1, "b1": b1, "w2": w2, "b2": b2,
            "w3": w3, "b3": b3, "w4": w4, "b4": b4}


def autoencoder_reference(x_nchw, p):
    """Pure-JAX f32 reference for correctness checking."""
    B, C, H, W = x_nchw.shape
    x = x_nchw.reshape(B, C * H * W)
    h1 = jnp.maximum(x @ p["w1"] + p["b1"], 0.0)
    z = h1 @ p["w2"] + p["b2"]
    h2 = jnp.maximum(z @ p["w3"] + p["b3"], 0.0)
    y = jax.nn.sigmoid(h2 @ p["w4"] + p["b4"])
    return y.reshape(B, C, H, W)


if __name__ == "__main__":
    # Small shapes consistent with an image autoencoder: NCHW input.
    B, C, Himg, Wimg = 2, 4, 16, 16
    D = C * Himg * Wimg            # 1024
    HID = 256                      # hidden width
    ZD = 32                        # latent dim (the `zd` ctor arg)

    key = jax.random.PRNGKey(0)
    kx, kp = jax.random.split(key)
    x = jax.random.normal(kx, (B, C, Himg, Wimg), jnp.float32)
    params = init_params(kp, D, HID, ZD)
    packed = pack_params(params)

    xhat = autoencoder_forward(x, packed)          # bf16 output (default)
    xhat = jax.block_until_ready(xhat)

    ref = autoencoder_reference(x, params)
    assert xhat.shape == x.shape, (xhat.shape, x.shape)
    # bf16 matmul path + bf16 output storage: loosen tolerance vs pure-f32 ref.
    err = float(jnp.max(jnp.abs(xhat.astype(jnp.float32) - ref)))
    assert err < 2e-2, f"mismatch vs reference, max abs err = {err}"

    print("KERNEL_OK")
</pallas_src>

<mosaic_0001>
module attributes {stable_mosaic.version = 11 : i64} {
  func.func @_ae_kernel(%arg0: i32, %arg1: memref<8x1024xbf16, #tpu.memory_space<vmem>>, %arg2: memref<1024x256xbf16, #tpu.memory_space<vmem>>, %arg3: memref<1x256xf32, #tpu.memory_space<vmem>>, %arg4: memref<256x128xbf16, #tpu.memory_space<vmem>>, %arg5: memref<1x128xf32, #tpu.memory_space<vmem>>, %arg6: memref<128x256xbf16, #tpu.memory_space<vmem>>, %arg7: memref<1x256xf32, #tpu.memory_space<vmem>>, %arg8: memref<256x1024xbf16, #tpu.memory_space<vmem>>, %arg9: memref<1x1024xf32, #tpu.memory_space<vmem>>, %arg10: memref<8x1024xbf16, #tpu.memory_space<vmem>>) attributes {dimension_semantics = [#tpu.dimension_semantics<parallel>], iteration_bounds = array<i64: 1>, scalar_prefetch = 0 : i64, scratch_operands = 0 : i64, tpu.core_type = #tpu.core_type<tc>, window_params = [{transform_indices = @transform_0, window_bounds = array<i64: 8, 1024>}, {pipeline_mode = #tpu.pipeline_mode<synchronous>, transform_indices = @transform_1, window_bounds = array<i64: 1024, 256>}, {pipeline_mode = #tpu.pipeline_mode<synchronous>, transform_indices = @transform_2, window_bounds = array<i64: 1, 256>}, {pipeline_mode = #tpu.pipeline_mode<synchronous>, transform_indices = @transform_3, window_bounds = array<i64: 256, 128>}, {pipeline_mode = #tpu.pipeline_mode<synchronous>, transform_indices = @transform_4, window_bounds = array<i64: 1, 128>}, {pipeline_mode = #tpu.pipeline_mode<synchronous>, transform_indices = @transform_5, window_bounds = array<i64: 128, 256>}, {pipeline_mode = #tpu.pipeline_mode<synchronous>, transform_indices = @transform_6, window_bounds = array<i64: 1, 256>}, {pipeline_mode = #tpu.pipeline_mode<synchronous>, transform_indices = @transform_7, window_bounds = array<i64: 256, 1024>}, {pipeline_mode = #tpu.pipeline_mode<synchronous>, transform_indices = @transform_8, window_bounds = array<i64: 1, 1024>}, {transform_indices = @transform_9, window_bounds = array<i64: 8, 1024>}]} {
    %c0 = arith.constant 0 : index
    %c0_0 = arith.constant 0 : index
    %0 = vector.load %arg2[%c0, %c0_0] : memref<1024x256xbf16, #tpu.memory_space<vmem>>, vector<1024x256xbf16>
    %c0_1 = arith.constant 0 : index
    %c0_2 = arith.constant 0 : index
    %1 = vector.load %arg4[%c0_1, %c0_2] : memref<256x128xbf16, #tpu.memory_space<vmem>>, vector<256x128xbf16>
    %c0_3 = arith.constant 0 : index
    %c0_4 = arith.constant 0 : index
    %2 = vector.load %arg6[%c0_3, %c0_4] : memref<128x256xbf16, #tpu.memory_space<vmem>>, vector<128x256xbf16>
    %c0_5 = arith.constant 0 : index
    %c0_6 = arith.constant 0 : index
    %3 = vector.load %arg8[%c0_5, %c0_6] : memref<256x1024xbf16, #tpu.memory_space<vmem>>, vector<256x1024xbf16>
    %c0_7 = arith.constant 0 : index
    %c0_8 = arith.constant 0 : index
    %4 = vector.load %arg3[%c0_7, %c0_8] : memref<1x256xf32, #tpu.memory_space<vmem>>, vector<1x256xf32>
    %c0_9 = arith.constant 0 : index
    %c0_10 = arith.constant 0 : index
    %5 = vector.load %arg5[%c0_9, %c0_10] : memref<1x128xf32, #tpu.memory_space<vmem>>, vector<1x128xf32>
    %c0_11 = arith.constant 0 : index
    %c0_12 = arith.constant 0 : index
    %6 = vector.load %arg7[%c0_11, %c0_12] : memref<1x256xf32, #tpu.memory_space<vmem>>, vector<1x256xf32>
    %c0_13 = arith.constant 0 : index
    %c0_14 = arith.constant 0 : index
    %7 = vector.load %arg9[%c0_13, %c0_14] : memref<1x1024xf32, #tpu.memory_space<vmem>>, vector<1x1024xf32>
    %c0_15 = arith.constant 0 : index
    %c0_16 = arith.constant 0 : index
    %8 = vector.load %arg1[%c0_15, %c0_16] : memref<8x1024xbf16, #tpu.memory_space<vmem>>, vector<8x1024xbf16>
    %cst = arith.constant dense<0.000000e+00> : vector<8x256xf32>
    %9 = tpu.matmul %8, %0, %cst {dimension_numbers = #tpu.dot_dimension_numbers<[1], [0], [0], [1], [0, 0, 1, 1], [], []>} : vector<8x1024xbf16>, vector<1024x256xbf16>, vector<8x256xf32> -> vector<8x256xf32>
    %10 = vector.broadcast %4 : vector<1x256xf32> to vector<8x256xf32>
    %11 = arith.addf %9, %10 : vector<8x256xf32>
    %cst_17 = arith.constant 0.000000e+00 : f32
    %12 = vector.broadcast %cst_17 : f32 to vector<8x256xf32>
    %13 = arith.maximumf %11, %12 : vector<8x256xf32>
    %14 = arith.truncf %13 : vector<8x256xf32> to vector<8x256xbf16>
    %cst_18 = arith.constant dense<0.000000e+00> : vector<8x128xf32>
    %15 = tpu.matmul %14, %1, %cst_18 {dimension_numbers = #tpu.dot_dimension_numbers<[1], [0], [0], [1], [0, 0, 1, 1], [], []>} : vector<8x256xbf16>, vector<256x128xbf16>, vector<8x128xf32> -> vector<8x128xf32>
    %16 = vector.broadcast %5 : vector<1x128xf32> to vector<8x128xf32>
    %17 = arith.addf %15, %16 : vector<8x128xf32>
    %18 = arith.truncf %17 : vector<8x128xf32> to vector<8x128xbf16>
    %cst_19 = arith.constant dense<0.000000e+00> : vector<8x256xf32>
    %19 = tpu.matmul %18, %2, %cst_19 {dimension_numbers = #tpu.dot_dimension_numbers<[1], [0], [0], [1], [0, 0, 1, 1], [], []>} : vector<8x128xbf16>, vector<128x256xbf16>, vector<8x256xf32> -> vector<8x256xf32>
    %20 = vector.broadcast %6 : vector<1x256xf32> to vector<8x256xf32>
    %21 = arith.addf %19, %20 : vector<8x256xf32>
    %cst_20 = arith.constant 0.000000e+00 : f32
    %22 = vector.broadcast %cst_20 : f32 to vector<8x256xf32>
    %23 = arith.maximumf %21, %22 : vector<8x256xf32>
    %24 = arith.truncf %23 : vector<8x256xf32> to vector<8x256xbf16>
    %cst_21 = arith.constant dense<0.000000e+00> : vector<8x1024xf32>
    %25 = tpu.matmul %24, %3, %cst_21 {dimension_numbers = #tpu.dot_dimension_numbers<[1], [0], [0], [1], [0, 0, 1, 1], [], []>} : vector<8x256xbf16>, vector<256x1024xbf16>, vector<8x1024xf32> -> vector<8x1024xf32>
    %26 = vector.broadcast %7 : vector<1x1024xf32> to vector<8x1024xf32>
    %27 = arith.addf %25, %26 : vector<8x1024xf32>
    %cst_22 = arith.constant 5.000000e-01 : f32
    %28 = vector.broadcast %cst_22 : f32 to vector<8x1024xf32>
    %29 = arith.mulf %27, %28 : vector<8x1024xf32>
    %30 = math.tanh %29 : vector<8x1024xf32>
    %cst_23 = arith.constant 5.000000e-01 : f32
    %31 = vector.broadcast %cst_23 : f32 to vector<8x1024xf32>
    %32 = arith.mulf %30, %31 : vector<8x1024xf32>
    %cst_24 = arith.constant 5.000000e-01 : f32
    %33 = vector.broadcast %cst_24 : f32 to vector<8x1024xf32>
    %34 = arith.addf %32, %33 : vector<8x1024xf32>
    %35 = arith.truncf %34 : vector<8x1024xf32> to vector<8x1024xbf16>
    %c0_25 = arith.constant 0 : index
    %c0_26 = arith.constant 0 : index
    %36 = vector.load %arg10[%c0_25, %c0_26] : memref<8x1024xbf16, #tpu.memory_space<vmem>>, vector<8x1024xbf16>
    tpu.vector_store %arg10[%c0_25, %c0_26], %35 {strides = array<i32>} : memref<8x1024xbf16, #tpu.memory_space<vmem>>, vector<8x1024xbf16>,
    return
  }
  func.func @transform_0(%arg0: i32) -> (i32, i32) {
    %c0_i32 = arith.constant 0 : i32
    %c0_i32_0 = arith.constant 0 : i32
    return %arg0, %c0_i32 : i32, i32
  }
  func.func @transform_1(%arg0: i32) -> (i32, i32) {
    %c0_i32 = arith.constant 0 : i32
    %c0_i32_0 = arith.constant 0 : i32
    %c0_i32_1 = arith.constant 0 : i32
    return %c0_i32, %c0_i32_0 : i32, i32
  }
  func.func @transform_2(%arg0: i32) -> (i32, i32) {
    %c0_i32 = arith.constant 0 : i32
    %c0_i32_0 = arith.constant 0 : i32
    %c0_i32_1 = arith.constant 0 : i32
    return %c0_i32, %c0_i32_0 : i32, i32
  }
  func.func @transform_3(%arg0: i32) -> (i32, i32) {
    %c0_i32 = arith.constant 0 : i32
    %c0_i32_0 = arith.constant 0 : i32
    %c0_i32_1 = arith.constant 0 : i32
    return %c0_i32, %c0_i32_0 : i32, i32
  }
  func.func @transform_4(%arg0: i32) -> (i32, i32) {
    %c0_i32 = arith.constant 0 : i32
    %c0_i32_0 = arith.constant 0 : i32
    %c0_i32_1 = arith.constant 0 : i32
    return %c0_i32, %c0_i32_0 : i32, i32
  }
  func.func @transform_5(%arg0: i32) -> (i32, i32) {
    %c0_i32 = arith.constant 0 : i32
    %c0_i32_0 = arith.constant 0 : i32
    %c0_i32_1 = arith.constant 0 : i32
    return %c0_i32, %c0_i32_0 : i32, i32
  }
  func.func @transform_6(%arg0: i32) -> (i32, i32) {
    %c0_i32 = arith.constant 0 : i32
    %c0_i32_0 = arith.constant 0 : i32
    %c0_i32_1 = arith.constant 0 : i32
    return %c0_i32, %c0_i32_0 : i32, i32
  }
  func.func @transform_7(%arg0: i32) -> (i32, i32) {
    %c0_i32 = arith.constant 0 : i32
    %c0_i32_0 = arith.constant 0 : i32
    %c0_i32_1 = arith.constant 0 : i32
    return %c0_i32, %c0_i32_0 : i32, i32
  }
  func.func @transform_8(%arg0: i32) -> (i32, i32) {
    %c0_i32 = arith.constant 0 : i32
    %c0_i32_0 = arith.constant 0 : i32
    %c0_i32_1 = arith.constant 0 : i32
    return %c0_i32, %c0_i32_0 : i32, i32
  }
  func.func @transform_9(%arg0: i32) -> (i32, i32) {
    %c0_i32 = arith.constant 0 : i32
    %c0_i32_0 = arith.constant 0 : i32
    return %arg0, %c0_i32 : i32, i32
  }
}

</mosaic_0001>

<bundles_post_ra>
// kernel: tpu_custom_call.1
= control target key start
LH: loop header
LB: loop body
LE: loop exit
PB: predicated region body
PF: predicated region fallthrough
CT: control target
= control target key end

     0   :  { %14 = vsyncpa [#allocation3], 0  ;;  %s3334_s0 = inlined_call_operand.hbm [shape: bf16[8,1024], index: 0, kind: input, shape index: {}]   ;;  %s3335_s1 = inlined_call_operand.hbm [shape: bf16[1024,256], index: 1, kind: input, shape index: {}]   ;;  %s3336_s2 = inlined_call_operand.vmem [shape: f32[1,256], index: 2, kind: input, shape index: {}]   ;;  %s3337_s3 = inlined_call_operand.hbm [shape: bf16[256,128], index: 3, kind: input, shape index: {}]   ;;  %s3338_s4 = inlined_call_operand.vmem [shape: f32[1,128], index: 4, kind: input, shape index: {}]   ;;  %s3339_s5 = inlined_call_operand.hbm [shape: bf16[128,256], index: 5, kind: input, shape index: {}]   ;;  %s3340_s6 = inlined_call_operand.vmem [shape: f32[1,256], index: 6, kind: input, shape index: {}]   ;;  %s3341_s7 = inlined_call_operand.hbm [shape: bf16[256,1024], index: 7, kind: input, shape index: {}]   ;;  %s3342_s8 = inlined_call_operand.vmem [shape: f32[1,1024], index: 8, kind: input, shape index: {}]   ;;  %s3343_s9 = inlined_call_operand.hbm [shape: bf16[8,1024], index: 9, kind: output, shape index: {}]  }
   0x1   :  { %15 = vsyncpa [#allocation6], 0 }
   0x2   :  { %16 = vsyncpa [#allocation9], 0 }
   0x3   :  { %17 = vsyncpa [#allocation4], 0  ;;  %s3192_s30 = smov [#allocation5]  }
   0x4   :  { %s33_s10 = sshll.u32 %s3192_s30, 4  ;;  %s34_s10 = int_to_ptr.vmem [resolvable:$true] %s33_s10 }
   0x5   :  { %s3072_s11 = scalar_lea.vmem %s34_s10, 16384  ;;  %p3077_p1 = scmp.lt.s32.totalorder %s34_s10, %s34_s10 }
   0x6   :  { %p3073_p0 = scmp.ne.s32.totalorder %s34_s10, %s3072_s11  ;;  %p3078_p2 = scmp.lt.s32.totalorder %s3072_s11, %s3072_s11 }
   0x8   :  { %p3079_p3 = por %p3078_p2, %p3077_p1 }
   0xa   :  { %p3080_p4 = pnand %p3079_p3, %p3073_p0 }
   0xc   :  { %3083 = shalt.err (!%p3080_p4)
}
   0xd   :  { %s3193_s12 = smov 128   ;;  %s3194_s13 = smov 8  }
   0xe   :  { %39 = dma.hbm_to_vmem [thread:$0]  %s3335_s1, 16384, %s34_s10, [#allocation6], %s3193_s12, %s3193_s12, %s3194_s13  }
   0xf   :  { %s3195_s16 = smov [#allocation8]   ;;  %s3196_s18 = smov [#allocation2]  }
  0x10   :  { %s61_s17 = sshll.u32 %s3195_s16, 4  ;;  %s24_s19 = sshll.u32 %s3196_s18, 4  ;;  %s62_s17 = int_to_ptr.vmem [resolvable:$true] %s61_s17  ;;  %s25_s19 = int_to_ptr.vmem [resolvable:$true] %s24_s19 }
  0x11   :  { %s3092_s20 = scalar_lea.vmem %s62_s17, 2048  ;;  %p3097_p6 = scmp.lt.s32.totalorder %s62_s17, %s62_s17 }
  0x12   :  { %p3093_p5 = scmp.ne.s32.totalorder %s62_s17, %s3092_s20  ;;  %p3098_p7 = scmp.lt.s32.totalorder %s3092_s20, %s3092_s20 }
  0x14   :  { %p3099_p8 = por %p3098_p7, %p3097_p6 }
  0x16   :  { %p3100_p9 = pnand %p3099_p8, %p3093_p5 }
  0x18   :  { %3103 = shalt.err (!%p3100_p9)
}
  0x19   :  { %67 = dma.hbm_to_vmem [thread:$0]  %s3339_s5, 2048, %s62_s17, [#allocation9], %s3193_s12, %s3193_s12, %s3194_s13  }
  0x1a   :  { %s3112_s23 = scalar_lea.vmem %s25_s19, 512  ;;  %p3117_p11 = scmp.lt.s32.totalorder %s25_s19, %s25_s19 }
  0x1b   :  { %p3113_p10 = scmp.ne.s32.totalorder %s25_s19, %s3112_s23  ;;  %p3118_p12 = scmp.lt.s32.totalorder %s3112_s23, %s3112_s23 }
  0x1d   :  { %p3119_p13 = por %p3118_p12, %p3117_p11 }
  0x1f   :  { %p3120_p0 = pnand %p3119_p13, %p3113_p10 }
  0x21   :  { %3123 = shalt.err (!%p3120_p0)
}
  0x22   :  { %27 = dma.hbm_to_vmem [thread:$0]  %s3334_s0, 512, %s25_s19, [#allocation3]  }
  0x23   :  { %s3197_s25 = smov [#allocation7]  }
  0x24   :  { %s47_s26 = sshll.u32 %s3197_s25, 4  ;;  %s48_s26 = int_to_ptr.vmem [resolvable:$true] %s47_s26 }
  0x25   :  { %s3132_s27 = scalar_lea.vmem %s48_s26, 2048  ;;  %p3137_p2 = scmp.lt.s32.totalorder %s48_s26, %s48_s26 }
  0x26   :  { %p3133_p1 = scmp.ne.s32.totalorder %s48_s26, %s3132_s27  ;;  %p3138_p3 = scmp.lt.s32.totalorder %s3132_s27, %s3132_s27 }
  0x28   :  { %p3139_p4 = por %p3138_p3, %p3137_p2 }
  0x2a   :  { %p3140_p5 = pnand %p3139_p4, %p3133_p1 }
  0x2c   :  { %3143 = shalt.err (!%p3140_p5)
}
  0x2d   :  { %s3198_s5 = smov 64   ;;  %s3199_s28 = smov 4  }
  0x2e   :  { %53 = dma.hbm_to_vmem [thread:$0]  %s3337_s3, 2048, %s48_s26, [#allocation6], %s3198_s5, %s3198_s5, %s3199_s28  }
  0x2f   :  { %s3200_s10 = smov [#allocation10]  }
  0x30   :  { %s75_s11 = sshll.u32 %s3200_s10, 4  ;;  %s76_s11 = int_to_ptr.vmem [resolvable:$true] %s75_s11 }
  0x31   :  { %s3152_s0 = scalar_lea.vmem %s76_s11, 16384  ;;  %p3157_p7 = scmp.lt.s32.totalorder %s76_s11, %s76_s11 }
  0x32   :  { %p3153_p6 = scmp.ne.s32.totalorder %s76_s11, %s3152_s0  ;;  %p3158_p8 = scmp.lt.s32.totalorder %s3152_s0, %s3152_s0 }
  0x34   :  { %p3159_p9 = por %p3158_p8, %p3157_p7 }
  0x36   :  { %p3160_p10 = pnand %p3159_p9, %p3153_p6 }
  0x38   :  { %3163 = shalt.err (!%p3160_p10)
}
  0x39   :  { %s3201_s12 = smov 512   ;;  %s3202_s13 = smov 32  }
  0x3a   :  { %81 = dma.hbm_to_vmem [thread:$0]  %s3341_s7, 16384, %s76_s11, [#allocation9], %s3201_s12, %s3201_s12, %s3202_s13  }
  0x3b   :  { %3184 = dma.done.wait [#allocation3], 512  }
  0x3c   :  { %3185 = vsyncadd [#allocation3], 4294966784 }
  0x3d   :  { %3186 = dma.done.wait [#allocation6], 18432  }
  0x3e   :  { %3187 = vsyncadd [#allocation6], 4294948864 }
  0x3f   :  { %3188 = dma.done.wait [#allocation9], 18432  }
  0x40   :  { %3189 = vsyncadd [#allocation9], 4294948864  ;;  %v2808_v0 = vld [vmem:[#allocation5 + $0x74] ss:$8 sps:$4 sm:$0xff]   ;;  %v2812_v2 = vld [vmem:[#allocation5 + $0x70] ss:$8 sps:$4 sm:$0xff]  }
  0x41   :  { %v2810_v1 = vld [vmem:[#allocation5 + $0x174] ss:$8 sps:$4 sm:$0xff]   ;;  %1091 = vmatprep.subr.bf16.mxu0 %v2808_v0  ;;  %v2813_v3 = vld [vmem:[#allocation5 + $0x170] ss:$8 sps:$4 sm:$0xff]   ;;  %v2814_v4 = vld [vmem:[#allocation5 + $0x64] ss:$8 sps:$4 sm:$0xff]  }
  0x42   :  { %1132 = vmatprep.subr.bf16.mxu1 %v2810_v1  ;;  %1092 = vmatpush1.bf16.msra.mxu0 %v2812_v2  ;;  %v2816_v5 = vld [vmem:[#allocation5 + $0x164] ss:$8 sps:$4 sm:$0xff]   ;;  %v2818_v6 = vld [vmem:[#allocation5 + $0x60] ss:$8 sps:$4 sm:$0xff]   ;;  %v2820_v8 = vld [vmem:[#allocation5 + $0x54] ss:$8 sps:$4 sm:$0xff]  }
  0x43   :  { %1133 = vmatpush1.bf16.msra.mxu1 %v2813_v3  ;;  %1093 = vmatprep.subr.bf16.mxu0 %v2814_v4  ;;  %v2819_v7 = vld [vmem:[#allocation5 + $0x160] ss:$8 sps:$4 sm:$0xff]   ;;  %v2822_v9 = vld [vmem:[#allocation5 + $0x154] ss:$8 sps:$4 sm:$0xff]   ;;  %v2824_v10 = vld [vmem:[#allocation5 + $0x50] ss:$8 sps:$4 sm:$0xff]  }
  0x44   :  { %1134 = vmatprep.subr.bf16.mxu1 %v2816_v5  ;;  %v2825_v11 = vld [vmem:[#allocation5 + $0x150] ss:$8 sps:$4 sm:$0xff]   ;;  %v2826_v12 = vld [vmem:[#allocation5 + $0x44] ss:$8 sps:$4 sm:$0xff]   ;;  %v2830_v14 = vld [vmem:[#allocation5 + $0x40] ss:$8 sps:$4 sm:$0xff]  }
  0x45   :  { %v2828_v13 = vld [vmem:[#allocation5 + $0x144] ss:$8 sps:$4 sm:$0xff]   ;;  %v2831_v15 = vld [vmem:[#allocation5 + $0x140] ss:$8 sps:$4 sm:$0xff]   ;;  %v2832_v16 = vld [vmem:[#allocation5 + $0x34] ss:$8 sps:$4 sm:$0xff]  }
  0x46   :  { %1094 = vmatpush1.bf16.msra.mxu0 %v2818_v6  ;;  %v2834_v17 = vld [vmem:[#allocation5 + $0x134] ss:$8 sps:$4 sm:$0xff]   ;;  %v2836_v18 = vld [vmem:[#allocation5 + $0x30] ss:$8 sps:$4 sm:$0xff]   ;;  %v2838_v20 = vld [vmem:[#allocation5 + $0x24] ss:$8 sps:$4 sm:$0xff]  }
  0x47   :  { %1135 = vmatpush1.bf16.msra.mxu1 %v2819_v7  ;;  %1095 = vmatprep.subr.bf16.mxu0 %v2820_v8  ;;  %v2837_v19 = vld [vmem:[#allocation5 + $0x130] ss:$8 sps:$4 sm:$0xff]   ;;  %v2840_v21 = vld [vmem:[#allocation5 + $0x124] ss:$8 sps:$4 sm:$0xff]   ;;  %v2842_v22 = vld [vmem:[#allocation5 + $0x20] ss:$8 sps:$4 sm:$0xff]  }
  0x48   :  { %1136 = vmatprep.subr.bf16.mxu1 %v2822_v9  ;;  %v2843_v23 = vld [vmem:[#allocation5 + $0x120] ss:$8 sps:$4 sm:$0xff]   ;;  %v2844_v24 = vld [vmem:[#allocation5 + $0x14] ss:$8 sps:$4 sm:$0xff]   ;;  %v2848_v26 = vld [vmem:[#allocation5 + $0x10] ss:$8 sps:$4 sm:$0xff]  }
  0x49   :  { %v2846_v25 = vld [vmem:[#allocation5 + $0x114] ss:$8 sps:$4 sm:$0xff]   ;;  %v2849_v27 = vld [vmem:[#allocation5 + $0x110] ss:$8 sps:$4 sm:$0xff]   ;;  %v2850_v28 = vld [vmem:[#allocation5 + $0x4] ss:$8 sps:$4 sm:$0xff]  }
  0x4a   :  { %1096 = vmatpush1.bf16.msra.mxu0 %v2824_v10  ;;  %v2852_v29 = vld [vmem:[#allocation5 + $0x104] ss:$8 sps:$4 sm:$0xff]   ;;  %v2854_v30 = vld [vmem:[#allocation5] ss:$8 sps:$4 sm:$0xff]   ;;  %v2856_v32 = vld [vmem:[#allocation5 + $0xf4] ss:$8 sps:$4 sm:$0xff]  }
  0x4b   :  { %1137 = vmatpush1.bf16.msra.mxu1 %v2825_v11  ;;  %1097 = vmatprep.subr.bf16.mxu0 %v2826_v12  ;;  %v2855_v31 = vld [vmem:[#allocation5 + $0x100] ss:$8 sps:$4 sm:$0xff]   ;;  %v2858_v33 = vld [vmem:[#allocation5 + $0x1f4] ss:$8 sps:$4 sm:$0xff]   ;;  %v2860_v34 = vld [vmem:[#allocation5 + $0xf0] ss:$8 sps:$4 sm:$0xff]  }
  0x4c   :  { %1138 = vmatprep.subr.bf16.mxu1 %v2828_v13  ;;  %v2861_v35 = vld [vmem:[#allocation5 + $0x1f0] ss:$8 sps:$4 sm:$0xff]   ;;  %v2862_v36 = vld [vmem:[#allocation5 + $0xe4] ss:$8 sps:$4 sm:$0xff]   ;;  %v2866_v38 = vld [vmem:[#allocation5 + $0xe0] ss:$8 sps:$4 sm:$0xff]  }
  0x4d   :  { %v2864_v37 = vld [vmem:[#allocation5 + $0x1e4] ss:$8 sps:$4 sm:$0xff]   ;;  %v2867_v39 = vld [vmem:[#allocation5 + $0x1e0] ss:$8 sps:$4 sm:$0xff]   ;;  %v2868_v40 = vld [vmem:[#allocation5 + $0xd4] ss:$8 sps:$4 sm:$0xff]  }
  0x4e   :  { %1098 = vmatpush1.bf16.msra.mxu0 %v2830_v14  ;;  %v2870_v41 = vld [vmem:[#allocation5 + $0x1d4] ss:$8 sps:$4 sm:$0xff]   ;;  %v2872_v42 = vld [vmem:[#allocation5 + $0xd0] ss:$8 sps:$4 sm:$0xff]   ;;  %v2874_v44 = vld [vmem:[#allocation5 + $0xc4] ss:$8 sps:$4 sm:$0xff]  }
  0x4f   :  { %1139 = vmatpush1.bf16.msra.mxu1 %v2831_v15  ;;  %1099 = vmatprep.subr.bf16.mxu0 %v2832_v16  ;;  %v2873_v43 = vld [vmem:[#allocation5 + $0x1d0] ss:$8 sps:$4 sm:$0xff]   ;;  %v2876_v45 = vld [vmem:[#allocation5 + $0x1c4] ss:$8 sps:$4 sm:$0xff]   ;;  %v2878_v49 = vld [vmem:[#allocation5 + $0xc0] ss:$8 sps:$4 sm:$0xff]  }
  0x50   :  { %1140 = vmatprep.subr.bf16.mxu1 %v2834_v17  ;;  %v408_v46 = vld [vmem:[#allocation2] sm:$0xff]  ;;  %v409_v48 = vld [vmem:[#allocation2 + $0x8] sm:$0xff]  ;;  %v2880_v52 = vld [vmem:[#allocation5 + $0xb4] ss:$8 sps:$4 sm:$0xff]  }
  0x51   :  { %v2469_v47 = vcombine.high %v408_v46, %v408_v46  ;;  %v2879_v50 = vld [vmem:[#allocation5 + $0x1c0] ss:$8 sps:$4 sm:$0xff]   ;;  %v2471_v51 = vcombine.high %v409_v48, %v409_v48  ;;  %v2882_v53 = vld [vmem:[#allocation5 + $0x1b4] ss:$8 sps:$4 sm:$0xff]   ;;  %v2884_v54 = vld [vmem:[#allocation5 + $0xb0] ss:$8 sps:$4 sm:$0xff]   ;;  %v2468_v6 = vcombine.low %v408_v46, %v408_v46  ;;  %v2470_v7 = vcombine.low %v409_v48, %v409_v48 }
  0x52   :  { %1100 = vmatpush1.bf16.msra.mxu0 %v2836_v18  ;;  %v2885_v55 = vld [vmem:[#allocation5 + $0x1b0] ss:$8 sps:$4 sm:$0xff]   ;;  %v2886_v56 = vld [vmem:[#allocation5 + $0xa4] ss:$8 sps:$4 sm:$0xff]   ;;  %v2890_v58 = vld [vmem:[#allocation5 + $0xa0] ss:$8 sps:$4 sm:$0xff]  }
  0x53   :  { %1141 = vmatpush1.bf16.msra.mxu1 %v2837_v19  ;;  %1101 = vmatprep.subr.bf16.mxu0 %v2838_v20  ;;  %v2888_v57 = vld [vmem:[#allocation5 + $0x1a4] ss:$8 sps:$4 sm:$0xff]   ;;  %v2891_v59 = vld [vmem:[#allocation5 + $0x1a0] ss:$8 sps:$4 sm:$0xff]   ;;  %v2892_v60 = vld [vmem:[#allocation5 + $0x94] ss:$8 sps:$4 sm:$0xff]  }
  0x54   :  { %1142 = vmatprep.subr.bf16.mxu1 %v2840_v21  ;;  %1123 = vmatprep.mubr.bf16.mxu0 %v2469_v47  ;;  %v2894_v61 = vld [vmem:[#allocation5 + $0x194] ss:$8 sps:$4 sm:$0xff]   ;;  %v2896_v62 = vld [vmem:[#allocation5 + $0x90] ss:$8 sps:$4 sm:$0xff]   ;;  %v2898_v0 = vld [vmem:[#allocation5 + $0x84] ss:$8 sps:$4 sm:$0xff]  }
  0x55   :  { %1164 = vmatprep.mubr.bf16.mxu1 %v2471_v51  ;;  %v2897_v63 = vld [vmem:[#allocation5 + $0x190] ss:$8 sps:$4 sm:$0xff]   ;;  %v2900_v1 = vld [vmem:[#allocation5 + $0x184] ss:$8 sps:$4 sm:$0xff]   ;;  %v2902_v2 = vld [vmem:[#allocation5 + $0x80] ss:$8 sps:$4 sm:$0xff]  }
  0x56   :  { %1102 = vmatpush1.bf16.msra.mxu0 %v2842_v22  ;;  %v2903_v3 = vld [vmem:[#allocation5 + $0x180] ss:$8 sps:$4 sm:$0xff]   ;;  %v2910_v4 = vld [vmem:[#allocation5 + $0x274] ss:$8 sps:$4 sm:$0xff]   ;;  %v2908_v8 = vld [vmem:[#allocation5 + $0x270] ss:$8 sps:$4 sm:$0xff]  }
  0x57   :  { %1143 = vmatpush1.bf16.msra.mxu1 %v2843_v23  ;;  %1103 = vmatprep.subr.bf16.mxu0 %v2844_v24  ;;  %v2913_v5 = vld [vmem:[#allocation5 + $0x374] ss:$8 sps:$4 sm:$0xff]   ;;  %v2911_v9 = vld [vmem:[#allocation5 + $0x370] ss:$8 sps:$4 sm:$0xff]   ;;  %v2916_v10 = vld [vmem:[#allocation5 + $0x264] ss:$8 sps:$4 sm:$0xff]  }
  0x58   :  { %1144 = vmatprep.subr.bf16.mxu1 %v2846_v25  ;;  %v2919_v11 = vld [vmem:[#allocation5 + $0x364] ss:$8 sps:$4 sm:$0xff]   ;;  %v2914_v12 = vld [vmem:[#allocation5 + $0x260] ss:$8 sps:$4 sm:$0xff]   ;;  %v2922_v14 = vld [vmem:[#allocation5 + $0x254] ss:$8 sps:$4 sm:$0xff]  }
  0x59   :  { %v2917_v13 = vld [vmem:[#allocation5 + $0x360] ss:$8 sps:$4 sm:$0xff]   ;;  %v2925_v15 = vld [vmem:[#allocation5 + $0x354] ss:$8 sps:$4 sm:$0xff]   ;;  %v2920_v16 = vld [vmem:[#allocation5 + $0x250] ss:$8 sps:$4 sm:$0xff]  }
  0x5a   :  { %1104 = vmatpush1.bf16.msra.mxu0 %v2848_v26  ;;  %v2923_v17 = vld [vmem:[#allocation5 + $0x350] ss:$8 sps:$4 sm:$0xff]   ;;  %v2928_v18 = vld [vmem:[#allocation5 + $0x244] ss:$8 sps:$4 sm:$0xff]   ;;  %v2926_v20 = vld [vmem:[#allocation5 + $0x240] ss:$8 sps:$4 sm:$0xff]  }
  0x5b   :  { %1145 = vmatpush1.bf16.msra.mxu1 %v2849_v27  ;;  %1105 = vmatprep.subr.bf16.mxu0 %v2850_v28  ;;  %v2931_v19 = vld [vmem:[#allocation5 + $0x344] ss:$8 sps:$4 sm:$0xff]   ;;  %v2929_v21 = vld [vmem:[#allocation5 + $0x340] ss:$8 sps:$4 sm:$0xff]   ;;  %v2934_v22 = vld [vmem:[#allocation5 + $0x234] ss:$8 sps:$4 sm:$0xff]  }
  0x5c   :  { %1146 = vmatprep.subr.bf16.mxu1 %v2852_v29  ;;  %v2937_v23 = vld [vmem:[#allocation5 + $0x334] ss:$8 sps:$4 sm:$0xff]   ;;  %v2932_v24 = vld [vmem:[#allocation5 + $0x230] ss:$8 sps:$4 sm:$0xff]   ;;  %v2940_v26 = vld [vmem:[#allocation5 + $0x224] ss:$8 sps:$4 sm:$0xff]  }
  0x5d   :  { %v2935_v25 = vld [vmem:[#allocation5 + $0x330] ss:$8 sps:$4 sm:$0xff]   ;;  %v2943_v27 = vld [vmem:[#allocation5 + $0x324] ss:$8 sps:$4 sm:$0xff]   ;;  %v2938_v28 = vld [vmem:[#allocation5 + $0x220] ss:$8 sps:$4 sm:$0xff]  }
  0x5e   :  { %1106 = vmatpush1.bf16.msra.mxu0 %v2854_v30  ;;  %v2941_v29 = vld [vmem:[#allocation5 + $0x320] ss:$8 sps:$4 sm:$0xff]   ;;  %v2946_v30 = vld [vmem:[#allocation5 + $0x214] ss:$8 sps:$4 sm:$0xff]   ;;  %v2964_v46 = vld [vmem:[#allocation5 + $0x2e4] ss:$8 sps:$4 sm:$0xff]  }
  0x5f   :  { %1147 = vmatpush1.bf16.msra.mxu1 %v2855_v31  ;;  %1107 = vmatprep.subr.bf16.mxu0 %v2856_v32  ;;  %v2949_v31 = vld [vmem:[#allocation5 + $0x314] ss:$8 sps:$4 sm:$0xff]   ;;  %v2944_v32 = vld [vmem:[#allocation5 + $0x210] ss:$8 sps:$4 sm:$0xff]   ;;  %v2967_v47 = vld [vmem:[#allocation5 + $0x3e4] ss:$8 sps:$4 sm:$0xff]  }
  0x60   :  { %1148 = vmatprep.subr.bf16.mxu1 %v2858_v33  ;;  %v2947_v33 = vld [vmem:[#allocation5 + $0x310] ss:$8 sps:$4 sm:$0xff]   ;;  %v2962_v48 = vld [vmem:[#allocation5 + $0x2e0] ss:$8 sps:$4 sm:$0xff]   ;;  %v2973_v51 = vld [vmem:[#allocation5 + $0x3d4] ss:$8 sps:$4 sm:$0xff]  }
  0x62   :  { %1108 = vmatpush2.bf16.msra.mxu0 %v2860_v34  ;;  %v3270_v34 = vld [vmem:[#allocation2 + $0x10] sm:$0xff] }
  0x63   :  { %1149 = vmatpush2.bf16.msra.mxu1 %v2861_v35  ;;  %1109 = vmatprep.subr.bf16.mxu0 %v2862_v36  ;;  %v3272_v35 = vld [vmem:[#allocation2 + $0x18] sm:$0xff]  ;;  %v2952_v36 = vld [vmem:[#allocation5 + $0x204] ss:$8 sps:$4 sm:$0xff]  }
  0x64   :  { %1150 = vmatprep.subr.bf16.mxu1 %v2864_v37  ;;  %v2955_v37 = vld [vmem:[#allocation5 + $0x304] ss:$8 sps:$4 sm:$0xff]  }
  0x66   :  { %1110 = vmatpush2.bf16.msra.mxu0 %v2866_v38  ;;  %v2473_v38 = vcombine.high %v3270_v34, %v3270_v34 }
  0x67   :  { %1151 = vmatpush2.bf16.msra.mxu1 %v2867_v39  ;;  %1111 = vmatprep.subr.bf16.mxu0 %v2868_v40  ;;  %v2475_v39 = vcombine.high %v3272_v35, %v3272_v35  ;;  %v2950_v40 = vld [vmem:[#allocation5 + $0x200] ss:$8 sps:$4 sm:$0xff]  }
  0x68   :  { %1152 = vmatprep.subr.bf16.mxu1 %v2870_v41  ;;  %v2953_v41 = vld [vmem:[#allocation5 + $0x300] ss:$8 sps:$4 sm:$0xff]  }
  0x6a   :  { %1112 = vmatpush2.bf16.msra.mxu0 %v2872_v42  ;;  %v2958_v42 = vld [vmem:[#allocation5 + $0x2f4] ss:$8 sps:$4 sm:$0xff]  }
  0x6b   :  { %1153 = vmatpush2.bf16.msra.mxu1 %v2873_v43  ;;  %1113 = vmatprep.subr.bf16.mxu0 %v2874_v44  ;;  %v2961_v43 = vld [vmem:[#allocation5 + $0x3f4] ss:$8 sps:$4 sm:$0xff]   ;;  %v2956_v44 = vld [vmem:[#allocation5 + $0x2f0] ss:$8 sps:$4 sm:$0xff]  }
  0x6c   :  { %1154 = vmatprep.subr.bf16.mxu1 %v2876_v45  ;;  %v2959_v45 = vld [vmem:[#allocation5 + $0x3f0] ss:$8 sps:$4 sm:$0xff]  }
  0x6e   :  { %1114 = vmatpush2.bf16.msra.mxu0 %v2878_v49  ;;  %v2965_v49 = vld [vmem:[#allocation5 + $0x3e0] ss:$8 sps:$4 sm:$0xff]  }
  0x6f   :  { %1155 = vmatpush2.bf16.msra.mxu1 %v2879_v50  ;;  %1115 = vmatprep.subr.bf16.mxu0 %v2880_v52  ;;  %v2970_v50 = vld [vmem:[#allocation5 + $0x2d4] ss:$8 sps:$4 sm:$0xff]   ;;  %v2968_v52 = vld [vmem:[#allocation5 + $0x2d0] ss:$8 sps:$4 sm:$0xff]  }
  0x70   :  { %1156 = vmatprep.subr.bf16.mxu1 %v2882_v53  ;;  %v2971_v53 = vld [vmem:[#allocation5 + $0x3d0] ss:$8 sps:$4 sm:$0xff]  }
  0x72   :  { %1116 = vmatpush2.bf16.msra.mxu0 %v2884_v54  ;;  %v2976_v54 = vld [vmem:[#allocation5 + $0x2c4] ss:$8 sps:$4 sm:$0xff]  }
  0x73   :  { %1157 = vmatpush2.bf16.msra.mxu1 %v2885_v55  ;;  %1117 = vmatprep.subr.bf16.mxu0 %v2886_v56  ;;  %v2979_v55 = vld [vmem:[#allocation5 + $0x3c4] ss:$8 sps:$4 sm:$0xff]   ;;  %v2974_v56 = vld [vmem:[#allocation5 + $0x2c0] ss:$8 sps:$4 sm:$0xff]  }
  0x74   :  { %1158 = vmatprep.subr.bf16.mxu1 %v2888_v57  ;;  %v2977_v57 = vld [vmem:[#allocation5 + $0x3c0] ss:$8 sps:$4 sm:$0xff]  }
  0x76   :  { %1118 = vmatpush2.bf16.msra.mxu0 %v2890_v58  ;;  %v2982_v58 = vld [vmem:[#allocation5 + $0x2b4] ss:$8 sps:$4 sm:$0xff]  }
  0x77   :  { %1159 = vmatpush2.bf16.msra.mxu1 %v2891_v59  ;;  %1119 = vmatprep.subr.bf16.mxu0 %v2892_v60  ;;  %v2985_v59 = vld [vmem:[#allocation5 + $0x3b4] ss:$8 sps:$4 sm:$0xff]   ;;  %v2980_v60 = vld [vmem:[#allocation5 + $0x2b0] ss:$8 sps:$4 sm:$0xff]  }
  0x78   :  { %1160 = vmatprep.subr.bf16.mxu1 %v2894_v61  ;;  %v2983_v61 = vld [vmem:[#allocation5 + $0x3b0] ss:$8 sps:$4 sm:$0xff]  }
  0x7a   :  { %1120 = vmatpush2.bf16.msra.mxu0 %v2896_v62  ;;  %v2988_v62 = vld [vmem:[#allocation5 + $0x2a4] ss:$8 sps:$4 sm:$0xff]  }
  0x7b   :  { %1161 = vmatpush2.bf16.msra.mxu1 %v2897_v63  ;;  %1121 = vmatprep.subr.bf16.mxu0 %v2898_v0  ;;  %v2991_v63 = vld [vmem:[#allocation5 + $0x3a4] ss:$8 sps:$4 sm:$0xff]   ;;  %v2986_v0 = vld [vmem:[#allocation5 + $0x2a0] ss:$8 sps:$4 sm:$0xff]  }
  0x7c   :  { %1162 = vmatprep.subr.bf16.mxu1 %v2900_v1  ;;  %v2989_v1 = vld [vmem:[#allocation5 + $0x3a0] ss:$8 sps:$4 sm:$0xff]  }
  0x7e   :  { %1122 = vmatpush2.bf16.msra.mxu0 %v2902_v2  ;;  %v2994_v2 = vld [vmem:[#allocation5 + $0x294] ss:$8 sps:$4 sm:$0xff]  }
  0x7f   :  { %1163 = vmatpush2.bf16.msra.mxu1 %v2903_v3  ;;  %1173 = vmatprep.subr.bf16.mxu0 %v2910_v4  ;;  %v2997_v3 = vld [vmem:[#allocation5 + $0x394] ss:$8 sps:$4 sm:$0xff]   ;;  %v2992_v4 = vld [vmem:[#allocation5 + $0x290] ss:$8 sps:$4 sm:$0xff]  }
  0x80   :  { %1214 = vmatprep.subr.bf16.mxu1 %v2913_v5  ;;  %v2995_v5 = vld [vmem:[#allocation5 + $0x390] ss:$8 sps:$4 sm:$0xff]  }
  0x81   :  { %1124 = vmatmul.mubr.bf16.vlgmr.msra.gmra.mxu0 %v2468_v6  ;;  %v3000_v6 = vld [vmem:[#allocation5 + $0x284] ss:$8 sps:$4 sm:$0xff]  }
  0x82   :  { %1165 = vmatmul.mubr.bf16.vlgmr.msra.gmra.mxu1 %v2470_v7  ;;  %1174 = vmatpush1.bf16.msra.mxu0 %v2908_v8  ;;  %v3003_v7 = vld [vmem:[#allocation5 + $0x384] ss:$8 sps:$4 sm:$0xff]   ;;  %v2998_v8 = vld [vmem:[#allocation5 + $0x280] ss:$8 sps:$4 sm:$0xff]  }
  0x83   :  { %1215 = vmatpush1.bf16.msra.mxu1 %v2911_v9  ;;  %1175 = vmatprep.subr.bf16.mxu0 %v2916_v10  ;;  %v3001_v9 = vld [vmem:[#allocation5 + $0x380] ss:$8 sps:$4 sm:$0xff]   ;;  %v2472_v10 = vcombine.low %v3270_v34, %v3270_v34  ;;  %v3035_v34 = vld [vmem:[#allocation8 + $0x44] ss:$8 sps:$4 sm:$0xff]  }
  0x84   :  { %1216 = vmatprep.subr.bf16.mxu1 %v2919_v11  ;;  %1205 = vmatprep.mubr.bf16.mxu0 %v2473_v38  ;;  %v2474_v11 = vcombine.low %v3272_v35, %v3272_v35  ;;  %v3033_v35 = vld [vmem:[#allocation8 + $0x40] ss:$8 sps:$4 sm:$0xff]   ;;  %v3041_v38 = vld [vmem:[#allocation8 + $0x24] ss:$8 sps:$4 sm:$0xff]  }
  0x85   :  { %1246 = vmatprep.mubr.bf16.mxu1 %v2475_v39  ;;  %v3039_v39 = vld [vmem:[#allocation8 + $0x20] ss:$8 sps:$4 sm:$0xff]  }
  0x86   :  { %1176 = vmatpush1.bf16.msra.mxu0 %v2914_v12  ;;  %v3008_v12 = vld [vmem:[#allocation7 + $0x78] sm:$0xff]  }
  0x87   :  { %1217 = vmatpush1.bf16.msra.mxu1 %v2917_v13  ;;  %1177 = vmatprep.subr.bf16.mxu0 %v2922_v14  ;;  %v3009_v13 = vld [vmem:[#allocation7 + $0x38] sm:$0xff]   ;;  %v3010_v14 = vld [vmem:[#allocation7 + $0x70] sm:$0xff]  }
  0x88   :  { %1218 = vmatprep.subr.bf16.mxu1 %v2925_v15  ;;  %v3011_v15 = vld [vmem:[#allocation7 + $0x30] sm:$0xff]  }
  0x8a   :  { %1178 = vmatpush1.bf16.msra.mxu0 %v2920_v16  ;;  %v3012_v16 = vld [vmem:[#allocation7 + $0x68] sm:$0xff]  }
  0x8b   :  { %1219 = vmatpush1.bf16.msra.mxu1 %v2923_v17  ;;  %1179 = vmatprep.subr.bf16.mxu0 %v2928_v18  ;;  %v3013_v17 = vld [vmem:[#allocation7 + $0x28] sm:$0xff]   ;;  %v3014_v18 = vld [vmem:[#allocation7 + $0x60] sm:$0xff]  }
  0x8c   :  { %1220 = vmatprep.subr.bf16.mxu1 %v2931_v19  ;;  %v3015_v19 = vld [vmem:[#allocation7 + $0x20] sm:$0xff]  }
  0x8e   :  { %1180 = vmatpush1.bf16.msra.mxu0 %v2926_v20  ;;  %v3016_v20 = vld [vmem:[#allocation7 + $0x58] sm:$0xff]  }
  0x8f   :  { %1221 = vmatpush1.bf16.msra.mxu1 %v2929_v21  ;;  %1181 = vmatprep.subr.bf16.mxu0 %v2934_v22  ;;  %v3017_v21 = vld [vmem:[#allocation7 + $0x18] sm:$0xff]   ;;  %v3018_v22 = vld [vmem:[#allocation7 + $0x50] sm:$0xff]  }
  0x90   :  { %1222 = vmatprep.subr.bf16.mxu1 %v2937_v23  ;;  %v3019_v23 = vld [vmem:[#allocation7 + $0x10] sm:$0xff]  }
  0x92   :  { %1182 = vmatpush1.bf16.msra.mxu0 %v2932_v24  ;;  %v3020_v24 = vld [vmem:[#allocation7 + $0x48] sm:$0xff]  }
  0x93   :  { %1223 = vmatpush1.bf16.msra.mxu1 %v2935_v25  ;;  %1183 = vmatprep.subr.bf16.mxu0 %v2940_v26  ;;  %v3021_v25 = vld [vmem:[#allocation7 + $0x8] sm:$0xff]   ;;  %v3022_v26 = vld [vmem:[#allocation7 + $0x40] sm:$0xff]  }
  0x94   :  { %1224 = vmatprep.subr.bf16.mxu1 %v2943_v27  ;;  %v3023_v27 = vld [vmem:[#allocation7] sm:$0xff]  }
  0x96   :  { %1184 = vmatpush1.bf16.msra.mxu0 %v2938_v28  ;;  %v3024_v28 = vld [vmem:[#allocation8 + $0x70] ss:$8 sps:$4 sm:$0xff]  }
  0x97   :  { %1225 = vmatpush1.bf16.msra.mxu1 %v2941_v29  ;;  %1185 = vmatprep.subr.bf16.mxu0 %v2946_v30  ;;  %v3026_v29 = vld [vmem:[#allocation8 + $0x74] ss:$8 sps:$4 sm:$0xff]   ;;  %v3029_v30 = vld [vmem:[#allocation8 + $0x64] ss:$8 sps:$4 sm:$0xff]  }
  0x98   :  { %1226 = vmatprep.subr.bf16.mxu1 %v2949_v31  ;;  %v3027_v31 = vld [vmem:[#allocation8 + $0x60] ss:$8 sps:$4 sm:$0xff]  }
  0x9a   :  { %1186 = vmatpush1.bf16.msra.mxu0 %v2944_v32  ;;  %v3032_v32 = vld [vmem:[#allocation8 + $0x54] ss:$8 sps:$4 sm:$0xff]  }
  0x9b   :  { %1227 = vmatpush1.bf16.msra.mxu1 %v2947_v33  ;;  %1187 = vmatprep.subr.bf16.mxu0 %v2952_v36  ;;  %v3030_v33 = vld [vmem:[#allocation8 + $0x50] ss:$8 sps:$4 sm:$0xff]   ;;  %v3038_v36 = vld [vmem:[#allocation8 + $0x34] ss:$8 sps:$4 sm:$0xff]  }
  0x9c   :  { %1228 = vmatprep.subr.bf16.mxu1 %v2955_v37  ;;  %v3036_v37 = vld [vmem:[#allocation8 + $0x30] ss:$8 sps:$4 sm:$0xff]  }
  0x9e   :  { %1188 = vmatpush1.bf16.msra.mxu0 %v2950_v40 }
  0x9f   :  { %1229 = vmatpush1.bf16.msra.mxu1 %v2953_v41  ;;  %1189 = vmatprep.subr.bf16.mxu0 %v2958_v42 }
  0xa0   :  { %1230 = vmatprep.subr.bf16.mxu1 %v2961_v43 }
  0xa2   :  { %1190 = vmatpush2.bf16.msra.mxu0 %v2956_v44 }
  0xa3   :  { %1231 = vmatpush2.bf16.msra.mxu1 %v2959_v45  ;;  %1191 = vmatprep.subr.bf16.mxu0 %v2964_v46 }
  0xa4   :  { %1232 = vmatprep.subr.bf16.mxu1 %v2967_v47 }
  0xa6   :  { %1192 = vmatpush2.bf16.msra.mxu0 %v2962_v48  ;;  %v413_v48 = vlaneseq }
  0xa7   :  { %1233 = vmatpush2.bf16.msra.mxu1 %v2965_v49  ;;  %1193 = vmatprep.subr.bf16.mxu0 %v2970_v50 }
  0xa8   :  { %1234 = vmatprep.subr.bf16.mxu1 %v2973_v51  ;;  %v3282_v49 = vshrl.u32 %v413_v48, 7  ;;  %v404_v51 = vld [vmem:[%s3336_s2] sm:$0x3] }
  0xa9   :  { %v276_v48 = vld [vmem:[#allocation10] sm:$0xff] }
  0xaa   :  { %1194 = vmatpush2.bf16.msra.mxu0 %v2968_v52  ;;  %v3285_v50 = vsub.s32 0, %v3282_v49  ;;  %v3291_v52 = vsub.s32 1, %v3282_v49 }
  0xab   :  { %1235 = vmatpush2.bf16.msra.mxu1 %v2971_v53  ;;  %1195 = vmatprep.subr.bf16.mxu0 %v2976_v54 }
  0xac   :  { %1236 = vmatprep.subr.bf16.mxu1 %v2979_v55  ;;  %v416_v53 = vrot.slane %v404_v51, %v3285_v50  ;;  %v420_v54 = vrot.slane %v404_v51, %v3291_v52  ;;  %v280_v51 = vld [vmem:[#allocation10 + $0x20] sm:$0xff] }
  0xae   :  { %1196 = vmatpush2.bf16.msra.mxu0 %v2974_v56 }
  0xaf   :  { %1237 = vmatpush2.bf16.msra.mxu1 %v2977_v57  ;;  %1197 = vmatprep.subr.bf16.mxu0 %v2982_v58 }
  0xb0   :  { %1238 = vmatprep.subr.bf16.mxu1 %v2985_v59 }
  0xb2   :  { %1198 = vmatpush2.bf16.msra.mxu0 %v2980_v60 }
  0xb3   :  { %1239 = vmatpush2.bf16.msra.mxu1 %v2983_v61  ;;  %1199 = vmatprep.subr.bf16.mxu0 %v2988_v62 }
  0xb4   :  { %1240 = vmatprep.subr.bf16.mxu1 %v2991_v63 }
  0xb6   :  { %1200 = vmatpush2.bf16.msra.mxu0 %v2986_v0 }
  0xb7   :  { %1241 = vmatpush2.bf16.msra.mxu1 %v2989_v1  ;;  %1201 = vmatprep.subr.bf16.mxu0 %v2994_v2 }
  0xb8   :  { %1242 = vmatprep.subr.bf16.mxu1 %v2997_v3 }
  0xba   :  { %1202 = vmatpush2.bf16.msra.mxu0 %v2992_v4 }
  0xbb   :  { %1243 = vmatpush2.bf16.msra.mxu1 %v2995_v5  ;;  %1203 = vmatprep.subr.bf16.mxu0 %v3000_v6 }
  0xbc   :  { %1244 = vmatprep.subr.bf16.mxu1 %v3003_v7 }
  0xbe   :  { %1204 = vmatpush2.bf16.msra.mxu0 %v2998_v8 }
  0xbf   :  { %1245 = vmatpush2.bf16.msra.mxu1 %v3001_v9  ;;  %2773 = vmatprep.subr.bf16.mxu0 %v3008_v12  ;;  %v3042_v12 = vld [vmem:[#allocation8 + $0x10] ss:$8 sps:$4 sm:$0xff]  }
  0xc0   :  { %1493 = vmatprep.subr.bf16.mxu1 %v3026_v29  ;;  %v320_v29 = vld [vmem:[#allocation10 + $0x160] sm:$0xff] }
  0xc1   :  { %1206 = vmatmul.mubr.bf16.vlgmr.msra.gmra.mxu0 %v2472_v10 }
  0xc2   :  { %1247 = vmatmul.mubr.bf16.vlgmr.msra.gmra.mxu1 %v2474_v11  ;;  %2774 = vmatpush3.bf16.msra.mxu0 %v3009_v13  ;;  %v3044_v11 = vld [vmem:[#allocation8 + $0x14] ss:$8 sps:$4 sm:$0xff]   ;;  %v3047_v13 = vld [vmem:[#allocation8 + $0x4] ss:$8 sps:$4 sm:$0xff]  }
  0xc3   :  { %2775 = vmatprep.subr.bf16.mxu0 %v3010_v14  ;;  %1494 = vmatpush1.bf16.msra.mxu1 %v3024_v28  ;;  %v3045_v14 = vld [vmem:[#allocation8] ss:$8 sps:$4 sm:$0xff]  }
  0xc4   :  { %1495 = vmatprep.subr.bf16.mxu1 %v3029_v30  ;;  %v316_v28 = vld [vmem:[#allocation10 + $0x140] sm:$0xff] }
  0xc5   :  { %v2678_v30 = vcombine.high %v316_v28, %v320_v29 }
  0xc6   :  { %2776 = vmatpush3.bf16.msra.mxu0 %v3011_v15  ;;  %v3203_v15 = vmov 0  }
  0xc7   :  { %2777 = vmatprep.subr.bf16.mxu0 %v3012_v16  ;;  %1496 = vmatpush1.bf16.msra.mxu1 %v3027_v31  ;;  %v332_v16 = vld [vmem:[#allocation10 + $0x1c0] sm:$0xff]  ;;  %v2677_v31 = vcombine.low %v316_v28, %v320_v29  ;;  %v317_v29 = vld [vmem:[#allocation10 + $0x148] sm:$0xff] }
  0xc8   :  { %1497 = vmatprep.subr.bf16.mxu1 %v3032_v32  ;;  %1525 = vmatprep.mubr.bf16.mxu1 %v3203_v15  ;;  %v308_v32 = vld [vmem:[#allocation10 + $0x100] sm:$0xff] }
  0xca   :  { %2778 = vmatpush3.bf16.msra.mxu0 %v3013_v17  ;;  %v336_v17 = vld [vmem:[#allocation10 + $0x1e0] sm:$0xff] }
  0xcb   :  { %2779 = vmatprep.subr.bf16.mxu0 %v3014_v18  ;;  %1498 = vmatpush1.bf16.msra.mxu1 %v3030_v33  ;;  %v3295_v18 = vld [vmem:[#allocation10 + $0x1c8] sm:$0xff]  ;;  %v312_v33 = vld [vmem:[#allocation10 + $0x120] sm:$0xff] }
  0xcc   :  { %1499 = vmatprep.subr.bf16.mxu1 %v3035_v34  ;;  %v2670_v34 = vcombine.high %v308_v32, %v312_v33 }
  0xce   :  { %2780 = vmatpush3.bf16.msra.mxu0 %v3015_v19  ;;  %v2693_v19 = vcombine.low %v332_v16, %v336_v17 }
  0xcf   :  { %2781 = vmatprep.subr.bf16.mxu0 %v3016_v20  ;;  %1500 = vmatpush1.bf16.msra.mxu1 %v3033_v35  ;;  %v2694_v20 = vcombine.high %v332_v16, %v336_v17  ;;  %v2669_v35 = vcombine.low %v308_v32, %v312_v33  ;;  %v2604_v16 = vld [vmem:[%s3338_s4] ss:$0 sm:$0xff]  ;;  %v309_v33 = vld [vmem:[#allocation10 + $0x108] sm:$0xff] }
  0xd0   :  { %1501 = vmatprep.subr.bf16.mxu1 %v3038_v36  ;;  %v300_v36 = vld [vmem:[#allocation10 + $0xc0] sm:$0xff] }
  0xd2   :  { %2782 = vmatpush3.bf16.msra.mxu0 %v3017_v21  ;;  %v3297_v21 = vld [vmem:[#allocation10 + $0x1e8] sm:$0xff] }
  0xd3   :  { %2783 = vmatprep.subr.bf16.mxu0 %v3018_v22  ;;  %1502 = vmatpush1.bf16.msra.mxu1 %v3036_v37  ;;  %v324_v22 = vld [vmem:[#allocation10 + $0x180] sm:$0xff] }
  0xd4   :  { %1503 = vmatprep.subr.bf16.mxu1 %v3041_v38  ;;  %v304_v37 = vld [vmem:[#allocation10 + $0xe0] sm:$0xff] }
  0xd5   :  { %v2662_v38 = vcombine.high %v300_v36, %v304_v37 }
  0xd6   :  { %2784 = vmatpush3.bf16.msra.mxu0 %v3019_v23  ;;  %v328_v23 = vld [vmem:[#allocation10 + $0x1a0] sm:$0xff] }
  0xd7   :  { %2785 = vmatprep.subr.bf16.mxu0 %v3020_v24  ;;  %1504 = vmatpush1.bf16.msra.mxu1 %v3039_v39  ;;  %v2695_v24 = vcombine.low %v3295_v18, %v3297_v21  ;;  %v2661_v39 = vcombine.low %v300_v36, %v304_v37  ;;  %v301_v37 = vld [vmem:[#allocation10 + $0xc8] sm:$0xff] }
  0xd8   :  { %1505 = vmatprep.subr.bf16.mxu1 %v3044_v11  ;;  %v356_v11 = vld [vmem:[#allocation10 + $0x280] sm:$0xff] }
  0xda   :  { %2786 = vmatpush3.bf16.msra.mxu0 %v3021_v25  ;;  %v2696_v25 = vcombine.high %v3295_v18, %v3297_v21 }
  0xdb   :  { %2787 = vmatprep.subr.bf16.mxu0 %v3022_v26  ;;  %1506 = vmatpush1.bf16.msra.mxu1 %v3042_v12  ;;  %v2686_v26 = vcombine.high %v324_v22, %v328_v23  ;;  %v360_v12 = vld [vmem:[#allocation10 + $0x2a0] sm:$0xff] }
  0xdc   :  { %1507 = vmatprep.subr.bf16.mxu1 %v3047_v13  ;;  %v2718_v13 = vcombine.high %v356_v11, %v360_v12 }
  0xde   :  { %2788 = vmatpush3.bf16.msra.mxu0 %v3023_v27  ;;  %v2685_v27 = vcombine.low %v324_v22, %v328_v23  ;;  %v325_v22 = vld [vmem:[#allocation10 + $0x188] sm:$0xff] }
  0xdf   :  { %1508 = vmatpush1.bf16.msra.mxu1 %v3045_v14  ;;  %2219 = vmatprep.subr.bf16.mxu0 %v2694_v20  ;;  %v2717_v14 = vcombine.low %v356_v11, %v360_v12  ;;  %v329_v23 = vld [vmem:[#allocation10 + $0x1a8] sm:$0xff] }
  0xe0   :  { %2260 = vmatprep.subr.bf16.mxu1 %v2696_v25  ;;  %v2688_v28 = vcombine.high %v325_v22, %v329_v23 }
 0x141   :  { %v1125_v40 = vpop.f32.mrf.mxu0 }
 0x142   :  { %v1166_v41 = vpop.f32.mrf.mxu1  ;;  %v1126_v55 = vadd.f32 %v1125_v40, %v416_v53  ;;  %v292_v40 = vld [vmem:[#allocation10 + $0x80] sm:$0xff]  ;;  %v2638_v53 = vcombine.high %v276_v48, %v280_v51 }
 0x143   :  { %v1127_v42 = vpop.f32.mrf.mxu0 }
 0x144   :  { %v1168_v43 = vpop.f32.mrf.mxu1  ;;  %v1128_v56 = vadd.f32 %v1127_v42, %v420_v54  ;;  %v1167_v57 = vadd.f32 %v1166_v41, %v1126_v55  ;;  %v296_v41 = vld [vmem:[#allocation10 + $0xa0] sm:$0xff]  ;;  %v2637_v54 = vcombine.low %v276_v48, %v280_v51 }
 0x145   :  { %v1129_v44 = vpop.f32.mrf.mxu0  ;;  %v2654_v42 = vcombine.high %v292_v40, %v296_v41  ;;  %v396_v55 = vld [vmem:[#allocation10 + $0x3c0] sm:$0xff] }
 0x146   :  { %v1170_v45 = vpop.f32.mrf.mxu1  ;;  %v1169_v60 = vadd.f32 %v1168_v43, %v1128_v56  ;;  %v2653_v43 = vcombine.low %v292_v40, %v296_v41  ;;  %v284_v44 = vld [vmem:[#allocation10 + $0x40] sm:$0xff]  ;;  %v293_v41 = vld [vmem:[#allocation10 + $0x88] sm:$0xff] }
 0x147   :  { %v1130_v46 = vpop.f32.mrf.mxu0  ;;  %v288_v45 = vld [vmem:[#allocation10 + $0x60] sm:$0xff] }
 0x148   :  { %v1171_v47 = vpop.f32.mrf.mxu1  ;;  %v2646_v46 = vcombine.high %v284_v44, %v288_v45  ;;  %v400_v56 = vld [vmem:[#allocation10 + $0x3e0] sm:$0xff] }
 0x149   :  { %v2645_v47 = vcombine.low %v284_v44, %v288_v45 }
 0x181   :  { %v1207_v58 = vpop.f32.mrf.mxu0 }
 0x182   :  { %v1248_v59 = vpop.f32.mrf.mxu1  ;;  %v1208_v61 = vadd.f32 %v1207_v58, %v1167_v57  ;;  %v2758_v57 = vcombine.high %v396_v55, %v400_v56  ;;  %v2757_v58 = vcombine.low %v396_v55, %v400_v56 }
 0x183   :  { %v1209_v62 = vpop.f32.mrf.mxu0 }
 0x184   :  { %v1250_v63 = vpop.f32.mrf.mxu1  ;;  %v1249_v0 = vadd.f32 %v1248_v59, %v1208_v61  ;;  %v1210_v1 = vadd.f32 %v1209_v62, %v1169_v60  ;;  %v388_v59 = vld [vmem:[#allocation10 + $0x380] sm:$0xff] }
 0x185   :  { %v1211_v2 = vpop.f32.mrf.mxu0  ;;  %v392_v60 = vld [vmem:[#allocation10 + $0x3a0] sm:$0xff] }
 0x186   :  { %v1252_v3 = vpop.f32.mrf.mxu1  ;;  %v1251_v4 = vadd.f32 %v1250_v63, %v1210_v1  ;;  %v1255_v5 = vmax.f32 %v1249_v0, 0.0  ;;  %v2750_v61 = vcombine.high %v388_v59, %v392_v60  ;;  %v2749_v62 = vcombine.low %v388_v59, %v392_v60  ;;  %v380_v63 = vld [vmem:[#allocation10 + $0x340] sm:$0xff] }
 0x187   :  { %v1212_v6 = vpop.f32.mrf.mxu0  ;;  %v384_v0 = vld [vmem:[#allocation10 + $0x360] sm:$0xff] }
 0x188   :  { %v1253_v7 = vpop.f32.mrf.mxu1  ;;  %v1256_v8 = vmax.f32 %v1251_v4, 0.0  ;;  %v1257_v10 = vpack.c.bf16 %v1255_v5, %v1255_v5  ;;  %v2742_v1 = vcombine.high %v380_v63, %v384_v0  ;;  %v2741_v2 = vcombine.low %v380_v63, %v384_v0  ;;  %v372_v3 = vld [vmem:[#allocation10 + $0x300] sm:$0xff] }
 0x189   :  { %v376_v4 = vld [vmem:[#allocation10 + $0x320] sm:$0xff] }
 0x18a   :  { %v1258_v9 = vpack.c.bf16 %v1256_v8, %v1256_v8  ;;  %v2734_v5 = vcombine.high %v372_v3, %v376_v4  ;;  %v2733_v6 = vcombine.low %v372_v3, %v376_v4  ;;  %v364_v7 = vld [vmem:[#allocation10 + $0x2c0] sm:$0xff] }
 0x18b   :  { %v368_v8 = vld [vmem:[#allocation10 + $0x2e0] sm:$0xff] }
 0x18c   :  { %1393 = vmatprep.mubr.bf16.mxu0 %v1258_v9  ;;  %v2726_v9 = vcombine.high %v364_v7, %v368_v8 }
 0x18d   :  { %1394 = vmatmul.mubr.bf16.vlgmr.msra.gmra.mxu0 %v1257_v10  ;;  %v2725_v10 = vcombine.low %v364_v7, %v368_v8 }
 0x18e   :  { %2220 = vmatpush1.bf16.msra.mxu0 %v2693_v19 }
 0x18f   :  { %2221 = vmatprep.subr.bf16.mxu0 %v2686_v26 }
 0x192   :  { %2222 = vmatpush1.bf16.msra.mxu0 %v2685_v27 }
 0x193   :  { %2223 = vmatprep.subr.bf16.mxu0 %v2678_v30  ;;  %v321_v30 = vld [vmem:[#allocation10 + $0x168] sm:$0xff] }
 0x194   :  { %v2680_v32 = vcombine.high %v317_v29, %v321_v30 }
 0x196   :  { %2224 = vmatpush1.bf16.msra.mxu0 %v2677_v31  ;;  %v2687_v31 = vcombine.low %v325_v22, %v329_v23 }
 0x197   :  { %2225 = vmatprep.subr.bf16.mxu0 %v2670_v34  ;;  %v313_v34 = vld [vmem:[#allocation10 + $0x128] sm:$0xff] }
 0x198   :  { %v2672_v36 = vcombine.high %v309_v33, %v313_v34 }
 0x19a   :  { %2226 = vmatpush1.bf16.msra.mxu0 %v2669_v35  ;;  %v2679_v35 = vcombine.low %v317_v29, %v321_v30  ;;  %v345_v29 = vld [vmem:[#allocation10 + $0x228] sm:$0xff] }
 0x19b   :  { %2227 = vmatprep.subr.bf16.mxu0 %v2662_v38  ;;  %v305_v38 = vld [vmem:[#allocation10 + $0xe8] sm:$0xff] }
 0x19c   :  { %v2664_v40 = vcombine.high %v301_v37, %v305_v38  ;;  %v2663_v18 = vcombine.low %v301_v37, %v305_v38  ;;  %v339_v37 = vld [vmem:[#allocation10 + $0x1f8] sm:$0xff] }
 0x19e   :  { %2228 = vmatpush1.bf16.msra.mxu0 %v2661_v39  ;;  %v2671_v39 = vcombine.low %v309_v33, %v313_v34  ;;  %v334_v33 = vld [vmem:[#allocation10 + $0x1d0] sm:$0xff] }
 0x19f   :  { %2229 = vmatprep.subr.bf16.mxu0 %v2654_v42  ;;  %v297_v42 = vld [vmem:[#allocation10 + $0xa8] sm:$0xff]  ;;  %v338_v34 = vld [vmem:[#allocation10 + $0x1f0] sm:$0xff] }
 0x1a0   :  { %v2656_v21 = vcombine.high %v293_v41, %v297_v42  ;;  %v2655_v44 = vcombine.low %v293_v41, %v297_v42  ;;  %v2697_v38 = vcombine.low %v334_v33, %v338_v34  ;;  %v406_v41 = vld [vmem:[%s3340_s6] sm:$0x3] }
 0x1a1   :  { %v1406_v42 = vrot.slane %v406_v41, %v3285_v50 }
 0x1a2   :  { %2230 = vmatpush1.bf16.msra.mxu0 %v2653_v43  ;;  %v289_v43 = vld [vmem:[#allocation10 + $0x68] sm:$0xff] }
 0x1a3   :  { %2231 = vmatprep.subr.bf16.mxu0 %v2646_v46  ;;  %v277_v46 = vld [vmem:[#allocation10 + $0x8] sm:$0xff] }
 0x1a6   :  { %2232 = vmatpush1.bf16.msra.mxu0 %v2645_v47  ;;  %v281_v47 = vld [vmem:[#allocation10 + $0x28] sm:$0xff] }
 0x1a7   :  { %2233 = vmatprep.subr.bf16.mxu0 %v2638_v53  ;;  %v2640_v51 = vcombine.high %v277_v46, %v281_v47  ;;  %v397_v53 = vld [vmem:[#allocation10 + $0x3c8] sm:$0xff]  ;;  %v2639_v55 = vcombine.low %v277_v46, %v281_v47 }
 0x1aa   :  { %2234 = vmatpush1.bf16.msra.mxu0 %v2637_v54  ;;  %v401_v54 = vld [vmem:[#allocation10 + $0x3e8] sm:$0xff] }
 0x1ab   :  { %2235 = vmatprep.subr.bf16.mxu0 %v2758_v57  ;;  %v2760_v56 = vcombine.high %v397_v53, %v401_v54  ;;  %v389_v57 = vld [vmem:[#allocation10 + $0x388] sm:$0xff]  ;;  %v2759_v59 = vcombine.low %v397_v53, %v401_v54  ;;  %v330_v53 = vld [vmem:[#allocation10 + $0x1b0] sm:$0xff]  ;;  %v327_v54 = vld [vmem:[#allocation10 + $0x198] sm:$0xff] }
 0x1ae   :  { %2236 = vmatpush2.bf16.msra.mxu0 %v2757_v58  ;;  %v393_v58 = vld [vmem:[#allocation10 + $0x3a8] sm:$0xff] }
 0x1af   :  { %2237 = vmatprep.subr.bf16.mxu0 %v2750_v61  ;;  %v2752_v60 = vcombine.high %v389_v57, %v393_v58  ;;  %v381_v61 = vld [vmem:[#allocation10 + $0x348] sm:$0xff]  ;;  %v2751_v63 = vcombine.low %v389_v57, %v393_v58  ;;  %v318_v58 = vld [vmem:[#allocation10 + $0x150] sm:$0xff] }
 0x1b2   :  { %2238 = vmatpush2.bf16.msra.mxu0 %v2749_v62  ;;  %v385_v62 = vld [vmem:[#allocation10 + $0x368] sm:$0xff] }
 0x1b3   :  { %2239 = vmatprep.subr.bf16.mxu0 %v2742_v1  ;;  %v2744_v0 = vcombine.high %v381_v61, %v385_v62  ;;  %v373_v1 = vld [vmem:[#allocation10 + $0x308] sm:$0xff]  ;;  %v2743_v3 = vcombine.low %v381_v61, %v385_v62  ;;  %v322_v61 = vld [vmem:[#allocation10 + $0x170] sm:$0xff]  ;;  %v319_v62 = vld [vmem:[#allocation10 + $0x158] sm:$0xff] }
 0x1b6   :  { %2240 = vmatpush2.bf16.msra.mxu0 %v2741_v2  ;;  %v377_v2 = vld [vmem:[#allocation10 + $0x328] sm:$0xff] }
 0x1b7   :  { %2241 = vmatprep.subr.bf16.mxu0 %v2734_v5  ;;  %v2736_v4 = vcombine.high %v373_v1, %v377_v2  ;;  %v365_v5 = vld [vmem:[#allocation10 + $0x2c8] sm:$0xff]  ;;  %v2735_v7 = vcombine.low %v373_v1, %v377_v2  ;;  %v2682_v2 = vcombine.high %v318_v58, %v322_v61 }
 0x1ba   :  { %2242 = vmatpush2.bf16.msra.mxu0 %v2733_v6  ;;  %v369_v6 = vld [vmem:[#allocation10 + $0x2e8] sm:$0xff] }
 0x1bb   :  { %2243 = vmatprep.subr.bf16.mxu0 %v2726_v9  ;;  %v2728_v8 = vcombine.high %v365_v5, %v369_v6  ;;  %v357_v9 = vld [vmem:[#allocation10 + $0x288] sm:$0xff]  ;;  %v2727_v11 = vcombine.low %v365_v5, %v369_v6  ;;  %v314_v5 = vld [vmem:[#allocation10 + $0x130] sm:$0xff]  ;;  %v311_v6 = vld [vmem:[#allocation10 + $0x118] sm:$0xff] }
 0x1be   :  { %2244 = vmatpush2.bf16.msra.mxu0 %v2725_v10  ;;  %v361_v10 = vld [vmem:[#allocation10 + $0x2a8] sm:$0xff] }
 0x1bf   :  { %2245 = vmatprep.subr.bf16.mxu0 %v2718_v13  ;;  %v2720_v12 = vcombine.high %v357_v9, %v361_v10  ;;  %v2719_v13 = vcombine.low %v357_v9, %v361_v10 }
 0x1c2   :  { %2246 = vmatpush2.bf16.msra.mxu0 %v2717_v14  ;;  %v348_v14 = vld [vmem:[#allocation10 + $0x240] sm:$0xff] }
 0x24d   :  { %v2789_v15 = vpop.f32.mrf.mxu0 }
 0x24f   :  { %v2790_v17 = vpop.f32.mrf.mxu0 }
 0x250   :  { %v2791_v19 = vadd.f32 %v2790_v17, %v2789_v15  ;;  %v352_v15 = vld [vmem:[#allocation10 + $0x260] sm:$0xff] }
 0x251   :  { %v2792_v20 = vpop.f32.mrf.mxu0  ;;  %v2710_v17 = vcombine.high %v348_v14, %v352_v15 }
 0x252   :  { %v1396_v25 = vadd.f32 %v2791_v19, %v2604_v16  ;;  %v349_v16 = vld [vmem:[#allocation10 + $0x248] sm:$0xff]  ;;  %v2709_v20 = vcombine.low %v348_v14, %v352_v15  ;;  %v303_v14 = vld [vmem:[#allocation10 + $0xd8] sm:$0xff] }
 0x253   :  { %v2793_v26 = vpop.f32.mrf.mxu0  ;;  %v353_v19 = vld [vmem:[#allocation10 + $0x268] sm:$0xff]  ;;  %2247 = vmatprep.subr.bf16.mxu0 %v2710_v17  ;;  %v307_v15 = vld [vmem:[#allocation10 + $0xf8] sm:$0xff] }
 0x254   :  { %v1401_v27 = vpack.c.bf16 %v1396_v25, %v1396_v25  ;;  %v2711_v22 = vcombine.low %v349_v16, %v353_v19  ;;  %v2712_v23 = vcombine.high %v349_v16, %v353_v19  ;;  %2248 = vmatpush2.bf16.msra.mxu0 %v2709_v20  ;;  %v340_v25 = vld [vmem:[#allocation10 + $0x200] sm:$0xff]  ;;  %v2668_v20 = vcombine.high %v303_v14, %v307_v15 }
 0x255   :  { %v344_v26 = vld [vmem:[#allocation10 + $0x220] sm:$0xff] }
 0x256   :  { %1526 = vmatmul.mubr.bf16.vlgmr.msra.gmra.mxu1 %v1401_v27  ;;  %v341_v27 = vld [vmem:[#allocation10 + $0x208] sm:$0xff]  ;;  %v2701_v30 = vcombine.low %v340_v25, %v344_v26 }
 0x257   :  { %2261 = vmatpush1.bf16.msra.mxu1 %v2695_v24  ;;  %v285_v24 = vld [vmem:[#allocation10 + $0x48] sm:$0xff] }
 0x258   :  { %2262 = vmatprep.subr.bf16.mxu1 %v2688_v28  ;;  %v2648_v45 = vcombine.high %v285_v24, %v289_v43  ;;  %v2647_v48 = vcombine.low %v285_v24, %v289_v43  ;;  %v2702_v28 = vcombine.high %v340_v25, %v344_v26  ;;  %v295_v25 = vld [vmem:[#allocation10 + $0x98] sm:$0xff] }
 0x259   :  { %v299_v26 = vld [vmem:[#allocation10 + $0xb8] sm:$0xff] }
 0x25a   :  { %2249 = vmatprep.subr.bf16.mxu0 %v2702_v28  ;;  %v2667_v28 = vcombine.low %v303_v14, %v307_v15 }
 0x25b   :  { %2263 = vmatpush1.bf16.msra.mxu1 %v2687_v31  ;;  %v2703_v31 = vcombine.low %v341_v27, %v345_v29  ;;  %2250 = vmatpush2.bf16.msra.mxu0 %v2701_v30  ;;  %v2660_v30 = vcombine.high %v295_v25, %v299_v26 }
 0x25c   :  { %2264 = vmatprep.subr.bf16.mxu1 %v2680_v32  ;;  %v2704_v32 = vcombine.high %v341_v27, %v345_v29 }
 0x25f   :  { %2265 = vmatpush1.bf16.msra.mxu1 %v2679_v35  ;;  %v335_v35 = vld [vmem:[#allocation10 + $0x1d8] sm:$0xff] }
 0x260   :  { %2266 = vmatprep.subr.bf16.mxu1 %v2672_v36  ;;  %v2698_v36 = vcombine.high %v334_v33, %v338_v34  ;;  %v287_v33 = vld [vmem:[#allocation10 + $0x58] sm:$0xff] }
 0x261   :  { %v291_v34 = vld [vmem:[#allocation10 + $0x78] sm:$0xff] }
 0x262   :  { %2301 = vmatprep.subr.bf16.mxu0 %v2698_v36  ;;  %v2659_v36 = vcombine.low %v295_v25, %v299_v26 }
 0x263   :  { %2267 = vmatpush1.bf16.msra.mxu1 %v2671_v39  ;;  %v2699_v39 = vcombine.low %v335_v35, %v339_v37 }
 0x264   :  { %2268 = vmatprep.subr.bf16.mxu1 %v2664_v40  ;;  %v2700_v40 = vcombine.high %v335_v35, %v339_v37 }
 0x267   :  { %2269 = vmatpush1.bf16.msra.mxu1 %v2663_v18  ;;  %v1410_v18 = vrot.slane %v406_v41, %v3291_v52  ;;  %v279_v41 = vld [vmem:[#allocation10 + $0x18] sm:$0xff] }
 0x268   :  { %2270 = vmatprep.subr.bf16.mxu1 %v2656_v21 }
 0x26b   :  { %2271 = vmatpush1.bf16.msra.mxu1 %v2655_v44 }
 0x26c   :  { %2272 = vmatprep.subr.bf16.mxu1 %v2648_v45 }
 0x26f   :  { %2273 = vmatpush1.bf16.msra.mxu1 %v2647_v48  ;;  %v326_v48 = vld [vmem:[#allocation10 + $0x190] sm:$0xff] }
 0x270   :  { %2274 = vmatprep.subr.bf16.mxu1 %v2640_v51 }
 0x273   :  { %2275 = vmatpush1.bf16.msra.mxu1 %v2639_v55  ;;  %v331_v55 = vld [vmem:[#allocation10 + $0x1b8] sm:$0xff] }
 0x274   :  { %2276 = vmatprep.subr.bf16.mxu1 %v2760_v56  ;;  %v2691_v1 = vcombine.low %v327_v54, %v331_v55 }
 0x277   :  { %2277 = vmatpush2.bf16.msra.mxu1 %v2759_v59  ;;  %v2690_v59 = vcombine.high %v326_v48, %v330_v53 }
 0x278   :  { %2278 = vmatprep.subr.bf16.mxu1 %v2752_v60  ;;  %v2692_v60 = vcombine.high %v327_v54, %v331_v55  ;;  %v390_v55 = vld [vmem:[#allocation10 + $0x390] sm:$0xff] }
 0x27b   :  { %2279 = vmatpush2.bf16.msra.mxu1 %v2751_v63  ;;  %v323_v63 = vld [vmem:[#allocation10 + $0x178] sm:$0xff] }
 0x27c   :  { %2280 = vmatprep.subr.bf16.mxu1 %v2744_v0  ;;  %v2689_v0 = vcombine.low %v326_v48, %v330_v53  ;;  %v2683_v9 = vcombine.low %v319_v62, %v323_v63 }
 0x27f   :  { %2281 = vmatpush2.bf16.msra.mxu1 %v2743_v3  ;;  %v2684_v3 = vcombine.high %v319_v62, %v323_v63 }
 0x280   :  { %2282 = vmatprep.subr.bf16.mxu1 %v2736_v4  ;;  %v310_v4 = vld [vmem:[#allocation10 + $0x110] sm:$0xff] }
 0x281   :  { %v2674_v10 = vcombine.high %v310_v4, %v314_v5  ;;  %v2673_v16 = vcombine.low %v310_v4, %v314_v5 }
 0x283   :  { %2283 = vmatpush2.bf16.msra.mxu1 %v2735_v7  ;;  %v315_v7 = vld [vmem:[#allocation10 + $0x138] sm:$0xff] }
 0x284   :  { %2284 = vmatprep.subr.bf16.mxu1 %v2728_v8  ;;  %v2681_v8 = vcombine.low %v318_v58, %v322_v61  ;;  %v2675_v17 = vcombine.low %v311_v6, %v315_v7  ;;  %v391_v58 = vld [vmem:[#allocation10 + $0x398] sm:$0xff] }
 0x287   :  { %2285 = vmatpush2.bf16.msra.mxu1 %v2727_v11  ;;  %v2676_v11 = vcombine.high %v311_v6, %v315_v7 }
 0x288   :  { %2286 = vmatprep.subr.bf16.mxu1 %v2720_v12  ;;  %v302_v12 = vld [vmem:[#allocation10 + $0xd0] sm:$0xff] }
 0x28b   :  { %2287 = vmatpush2.bf16.msra.mxu1 %v2719_v13  ;;  %v306_v13 = vld [vmem:[#allocation10 + $0xf0] sm:$0xff] }
 0x28c   :  { %2288 = vmatprep.subr.bf16.mxu1 %v2712_v23  ;;  %v2666_v19 = vcombine.high %v302_v12, %v306_v13  ;;  %v298_v23 = vld [vmem:[#allocation10 + $0xb0] sm:$0xff]  ;;  %v2665_v27 = vcombine.low %v302_v12, %v306_v13 }
 0x28f   :  { %2289 = vmatpush2.bf16.msra.mxu1 %v2711_v22  ;;  %v294_v22 = vld [vmem:[#allocation10 + $0x90] sm:$0xff] }
 0x290   :  { %2290 = vmatprep.subr.bf16.mxu1 %v2704_v32  ;;  %v2658_v29 = vcombine.high %v294_v22, %v298_v23  ;;  %v290_v32 = vld [vmem:[#allocation10 + $0x70] sm:$0xff]  ;;  %v2657_v35 = vcombine.low %v294_v22, %v298_v23 }
 0x293   :  { %2291 = vmatpush2.bf16.msra.mxu1 %v2703_v31  ;;  %v286_v31 = vld [vmem:[#allocation10 + $0x50] sm:$0xff] }
 0x294   :  { %2342 = vmatprep.subr.bf16.mxu1 %v2700_v40  ;;  %v2650_v37 = vcombine.high %v286_v31, %v290_v32  ;;  %v282_v40 = vld [vmem:[#allocation10 + $0x30] sm:$0xff] }
 0x316   :  { %v1527_v21 = vpop.f32.mrf.mxu1 }
 0x317   :  { %v1528_v24 = vadd.f32 %v1527_v21, %v1406_v42  ;;  %v283_v42 = vld [vmem:[#allocation10 + $0x38] sm:$0xff]  ;;  %v2651_v21 = vcombine.low %v287_v33, %v291_v34 }
 0x318   :  { %v1529_v43 = vpop.f32.mrf.mxu1 }
 0x319   :  { %v1530_v44 = vadd.f32 %v1529_v43, %v1410_v18  ;;  %v1534_v45 = vmax.f32 %v1528_v24, 0.0  ;;  %v2649_v18 = vcombine.low %v286_v31, %v290_v32  ;;  %v2644_v43 = vcombine.high %v279_v41, %v283_v42 }
 0x31a   :  { %v1531_v46 = vpop.f32.mrf.mxu1 }
 0x31b   :  { %v1535_v47 = vmax.f32 %v1530_v44, 0.0  ;;  %v3314_v57 = vpack.c.bf16 %v1534_v45, %v1534_v45  ;;  %v398_v44 = vld [vmem:[#allocation10 + $0x3d0] sm:$0xff]  ;;  %v399_v46 = vld [vmem:[#allocation10 + $0x3d8] sm:$0xff] }
 0x31c   :  { %v1532_v51 = vpop.f32.mrf.mxu1  ;;  %v402_v45 = vld [vmem:[#allocation10 + $0x3f0] sm:$0xff] }
 0x31d   :  { %v1537_v56 = vpack.c.bf16 %v1535_v47, %v1535_v47  ;;  %v403_v47 = vld [vmem:[#allocation10 + $0x3f8] sm:$0xff]  ;;  %v2643_v51 = vcombine.low %v279_v41, %v283_v42  ;;  %v2762_v53 = vcombine.high %v398_v44, %v402_v45 }
 0x31e   :  { %v2764_v54 = vcombine.high %v399_v46, %v403_v47  ;;  %v2763_v61 = vcombine.low %v399_v46, %v403_v47 }
 0x31f   :  { %2251 = vmatprep.mubr.bf16.mxu0 %v1537_v56  ;;  %2292 = vmatprep.mubr.bf16.mxu1 %v1537_v56 }
 0x320   :  { %2252 = vmatmul.mubr.bf16.vlgmr.msra.gmra.mxu0 %v3314_v57  ;;  %2293 = vmatmul.mubr.bf16.vlgmr.msra.gmra.mxu1 %v3314_v57 }
 0x321   :  { %2302 = vmatpush1.bf16.msra.mxu0 %v2697_v38  ;;  %2343 = vmatpush1.bf16.msra.mxu1 %v2699_v39  ;;  %v2652_v38 = vcombine.high %v287_v33, %v291_v34  ;;  %v278_v39 = vld [vmem:[#allocation10 + $0x10] sm:$0xff] }
 0x322   :  { %2333 = vmatprep.mubr.bf16.mxu0 %v1537_v56  ;;  %2374 = vmatprep.mubr.bf16.mxu1 %v1537_v56  ;;  %v2642_v24 = vcombine.high %v278_v39, %v282_v40  ;;  %v2641_v48 = vcombine.low %v278_v39, %v282_v40  ;;  %v394_v56 = vld [vmem:[#allocation10 + $0x3b0] sm:$0xff] }
 0x323   :  { %2303 = vmatprep.subr.bf16.mxu0 %v2690_v59  ;;  %2344 = vmatprep.subr.bf16.mxu1 %v2692_v60  ;;  %v395_v59 = vld [vmem:[#allocation10 + $0x3b8] sm:$0xff]  ;;  %v2761_v60 = vcombine.low %v398_v44, %v402_v45  ;;  %v2754_v62 = vcombine.high %v390_v55, %v394_v56  ;;  %v2753_v4 = vcombine.low %v390_v55, %v394_v56  ;;  %v1553_v55 = vsub.s32 3, %v3282_v49 }
 0x324   :  { %v2756_v63 = vcombine.high %v391_v58, %v395_v59  ;;  %v2755_v5 = vcombine.low %v391_v58, %v395_v59 }
 0x325   :  { %2304 = vmatpush1.bf16.msra.mxu0 %v2689_v0  ;;  %2345 = vmatpush1.bf16.msra.mxu1 %v2691_v1  ;;  %v382_v0 = vld [vmem:[#allocation10 + $0x350] sm:$0xff] }
 0x326   :  { %2305 = vmatprep.subr.bf16.mxu0 %v2682_v2  ;;  %2346 = vmatprep.subr.bf16.mxu1 %v2684_v3  ;;  %v386_v1 = vld [vmem:[#allocation10 + $0x370] sm:$0xff]  ;;  %v383_v2 = vld [vmem:[#allocation10 + $0x358] sm:$0xff] }
 0x327   :  { %v387_v3 = vld [vmem:[#allocation10 + $0x378] sm:$0xff]  ;;  %v2746_v6 = vcombine.high %v382_v0, %v386_v1  ;;  %v2745_v12 = vcombine.low %v382_v0, %v386_v1 }
 0x328   :  { %v2748_v7 = vcombine.high %v383_v2, %v387_v3  ;;  %v2747_v13 = vcombine.low %v383_v2, %v387_v3 }
 0x329   :  { %2306 = vmatpush1.bf16.msra.mxu0 %v2681_v8  ;;  %2347 = vmatpush1.bf16.msra.mxu1 %v2683_v9  ;;  %v374_v8 = vld [vmem:[#allocation10 + $0x310] sm:$0xff] }
 0x32a   :  { %2307 = vmatprep.subr.bf16.mxu0 %v2674_v10  ;;  %2348 = vmatprep.subr.bf16.mxu1 %v2676_v11  ;;  %v378_v9 = vld [vmem:[#allocation10 + $0x330] sm:$0xff]  ;;  %v375_v10 = vld [vmem:[#allocation10 + $0x318] sm:$0xff] }
 0x32b   :  { %v379_v11 = vld [vmem:[#allocation10 + $0x338] sm:$0xff]  ;;  %v2738_v14 = vcombine.high %v374_v8, %v378_v9  ;;  %v2737_v22 = vcombine.low %v374_v8, %v378_v9 }
 0x32c   :  { %v2740_v15 = vcombine.high %v375_v10, %v379_v11  ;;  %v2739_v23 = vcombine.low %v375_v10, %v379_v11 }
 0x32d   :  { %2308 = vmatpush1.bf16.msra.mxu0 %v2673_v16  ;;  %2349 = vmatpush1.bf16.msra.mxu1 %v2675_v17  ;;  %v366_v16 = vld [vmem:[#allocation10 + $0x2d0] sm:$0xff] }
 0x32e   :  { %2309 = vmatprep.subr.bf16.mxu0 %v2666_v19  ;;  %2350 = vmatprep.subr.bf16.mxu1 %v2668_v20  ;;  %v370_v17 = vld [vmem:[#allocation10 + $0x2f0] sm:$0xff]  ;;  %v367_v19 = vld [vmem:[#allocation10 + $0x2d8] sm:$0xff] }
 0x32f   :  { %v371_v20 = vld [vmem:[#allocation10 + $0x2f8] sm:$0xff]  ;;  %v2730_v25 = vcombine.high %v366_v16, %v370_v17  ;;  %v2729_v31 = vcombine.low %v366_v16, %v370_v17 }
 0x330   :  { %v2732_v26 = vcombine.high %v367_v19, %v371_v20  ;;  %v2731_v32 = vcombine.low %v367_v19, %v371_v20 }
 0x331   :  { %2310 = vmatpush1.bf16.msra.mxu0 %v2665_v27  ;;  %2351 = vmatpush1.bf16.msra.mxu1 %v2667_v28  ;;  %v358_v27 = vld [vmem:[#allocation10 + $0x290] sm:$0xff] }
 0x332   :  { %2311 = vmatprep.subr.bf16.mxu0 %v2658_v29  ;;  %2352 = vmatprep.subr.bf16.mxu1 %v2660_v30  ;;  %v362_v28 = vld [vmem:[#allocation10 + $0x2b0] sm:$0xff]  ;;  %v359_v29 = vld [vmem:[#allocation10 + $0x298] sm:$0xff] }
 0x333   :  { %v363_v30 = vld [vmem:[#allocation10 + $0x2b8] sm:$0xff]  ;;  %v2722_v33 = vcombine.high %v358_v27, %v362_v28  ;;  %v2721_v39 = vcombine.low %v358_v27, %v362_v28  ;;  %v1557_v27 = vsub.s32 4, %v3282_v49  ;;  %v1565_v28 = vsub.s32 6, %v3282_v49 }
 0x334   :  { %v2724_v34 = vcombine.high %v359_v29, %v363_v30  ;;  %v2723_v40 = vcombine.low %v359_v29, %v363_v30  ;;  %v1561_v29 = vsub.s32 5, %v3282_v49  ;;  %v1569_v30 = vsub.s32 7, %v3282_v49 }
 0x335   :  { %2312 = vmatpush1.bf16.msra.mxu0 %v2657_v35  ;;  %2353 = vmatpush1.bf16.msra.mxu1 %v2659_v36  ;;  %v350_v35 = vld [vmem:[#allocation10 + $0x250] sm:$0xff] }
 0x336   :  { %2313 = vmatprep.subr.bf16.mxu0 %v2650_v37  ;;  %2354 = vmatprep.subr.bf16.mxu1 %v2652_v38  ;;  %v354_v36 = vld [vmem:[#allocation10 + $0x270] sm:$0xff]  ;;  %v351_v37 = vld [vmem:[#allocation10 + $0x258] sm:$0xff] }
 0x337   :  { %v355_v38 = vld [vmem:[#allocation10 + $0x278] sm:$0xff]  ;;  %v2714_v41 = vcombine.high %v350_v35, %v354_v36  ;;  %v2713_v44 = vcombine.low %v350_v35, %v354_v36 }
 0x338   :  { %v2716_v42 = vcombine.high %v351_v37, %v355_v38  ;;  %v2715_v45 = vcombine.low %v351_v37, %v355_v38 }
 0x339   :  { %2314 = vmatpush1.bf16.msra.mxu0 %v2649_v18  ;;  %2355 = vmatpush1.bf16.msra.mxu1 %v2651_v21  ;;  %v342_v18 = vld [vmem:[#allocation10 + $0x210] sm:$0xff] }
 0x33a   :  { %2315 = vmatprep.subr.bf16.mxu0 %v2642_v24  ;;  %2356 = vmatprep.subr.bf16.mxu1 %v2644_v43  ;;  %v346_v21 = vld [vmem:[#allocation10 + $0x230] sm:$0xff]  ;;  %v343_v24 = vld [vmem:[#allocation10 + $0x218] sm:$0xff] }
 0x33b   :  { %v347_v43 = vld [vmem:[#allocation10 + $0x238] sm:$0xff]  ;;  %v2706_v46 = vcombine.high %v342_v18, %v346_v21 }
 0x33c   :  { %v2708_v47 = vcombine.high %v343_v24, %v347_v43 }
 0x33d   :  { %2316 = vmatpush1.bf16.msra.mxu0 %v2641_v48  ;;  %2357 = vmatpush1.bf16.msra.mxu1 %v2643_v51  ;;  %v2705_v48 = vcombine.low %v342_v18, %v346_v21  ;;  %v2707_v51 = vcombine.low %v343_v24, %v347_v43 }
 0x33e   :  { %2317 = vmatprep.subr.bf16.mxu0 %v2762_v53  ;;  %2358 = vmatprep.subr.bf16.mxu1 %v2764_v54  ;;  %v1549_v53 = vsub.s32 2, %v3282_v49  ;;  %v407_v54 = vld [vmem:[%s3342_s8] sm:$0xff]  ;;  %s3204_s8 = smov [#allocation11]  }
 0x33f   :  { %v1542_v56 = vrot.slane %v407_v54, %v3285_v50  ;;  %v1546_v59 = vrot.slane %v407_v54, %v3291_v52  ;;  %s2457_s19 = sshll.u32 %s3204_s8, 4  ;;  %s2458_s19 = int_to_ptr.vmem [resolvable:$true] %s2457_s19 }
 0x340   :  { %v1550_v58 = vrot.slane %v407_v54, %v1549_v53  ;;  %s3164_s20 = scalar_lea.vmem %s2458_s19, 512  ;;  %p3169_p12 = scmp.lt.s32.totalorder %s2458_s19, %s2458_s19 }
 0x341   :  { %2318 = vmatpush2.bf16.msra.mxu0 %v2761_v60  ;;  %2359 = vmatpush2.bf16.msra.mxu1 %v2763_v61  ;;  %v1554_v60 = vrot.slane %v407_v54, %v1553_v55  ;;  %p3165_p11 = scmp.ne.s32.totalorder %s2458_s19, %s3164_s20  ;;  %p3170_p13 = scmp.lt.s32.totalorder %s3164_s20, %s3164_s20 }
 0x342   :  { %2319 = vmatprep.subr.bf16.mxu0 %v2754_v62  ;;  %2360 = vmatprep.subr.bf16.mxu1 %v2756_v63 }
 0x343   :  { %p3171_p0 = por %p3170_p13, %p3169_p12 }
 0x345   :  { %2320 = vmatpush2.bf16.msra.mxu0 %v2753_v4  ;;  %2361 = vmatpush2.bf16.msra.mxu1 %v2755_v5  ;;  %p3172_p1 = pnand %p3171_p0, %p3165_p11 }
 0x346   :  { %2321 = vmatprep.subr.bf16.mxu0 %v2746_v6  ;;  %2362 = vmatprep.subr.bf16.mxu1 %v2748_v7 }
 0x349   :  { %2322 = vmatpush2.bf16.msra.mxu0 %v2745_v12  ;;  %2363 = vmatpush2.bf16.msra.mxu1 %v2747_v13 }
 0x34a   :  { %2323 = vmatprep.subr.bf16.mxu0 %v2738_v14  ;;  %2364 = vmatprep.subr.bf16.mxu1 %v2740_v15 }
 0x34d   :  { %2324 = vmatpush2.bf16.msra.mxu0 %v2737_v22  ;;  %2365 = vmatpush2.bf16.msra.mxu1 %v2739_v23 }
 0x34e   :  { %2325 = vmatprep.subr.bf16.mxu0 %v2730_v25  ;;  %2366 = vmatprep.subr.bf16.mxu1 %v2732_v26 }
 0x351   :  { %2326 = vmatpush2.bf16.msra.mxu0 %v2729_v31  ;;  %2367 = vmatpush2.bf16.msra.mxu1 %v2731_v32  ;;  %v1558_v31 = vrot.slane %v407_v54, %v1557_v27  ;;  %v1566_v32 = vrot.slane %v407_v54, %v1565_v28 }
 0x352   :  { %2327 = vmatprep.subr.bf16.mxu0 %v2722_v33  ;;  %2368 = vmatprep.subr.bf16.mxu1 %v2724_v34  ;;  %v1562_v33 = vrot.slane %v407_v54, %v1561_v29  ;;  %v1570_v34 = vrot.slane %v407_v54, %v1569_v30 }
 0x355   :  { %2328 = vmatpush2.bf16.msra.mxu0 %v2721_v39  ;;  %2369 = vmatpush2.bf16.msra.mxu1 %v2723_v40 }
 0x356   :  { %2329 = vmatprep.subr.bf16.mxu0 %v2714_v41  ;;  %2370 = vmatprep.subr.bf16.mxu1 %v2716_v42 }
 0x359   :  { %2330 = vmatpush2.bf16.msra.mxu0 %v2713_v44  ;;  %2371 = vmatpush2.bf16.msra.mxu1 %v2715_v45 }
 0x35a   :  { %2331 = vmatprep.subr.bf16.mxu0 %v2706_v46  ;;  %2372 = vmatprep.subr.bf16.mxu1 %v2708_v47 }
 0x35d   :  { %2332 = vmatpush2.bf16.msra.mxu0 %v2705_v48  ;;  %2373 = vmatpush2.bf16.msra.mxu1 %v2707_v51 }
 0x360   :  { %2334 = vmatmul.mubr.bf16.vlgmr.msra.gmra.mxu0 %v3314_v57  ;;  %2375 = vmatmul.mubr.bf16.vlgmr.msra.gmra.mxu1 %v3314_v57 }
 0x3e0   :  { %v2253_v61 = vpop.f32.mrf.mxu0  ;;  %v2294_v62 = vpop.f32.mrf.mxu1 }
 0x3e1   :  { %v2254_v63 = vadd.f32 %v2253_v61, %v1542_v56  ;;  %v2295_v0 = vadd.f32 %v2294_v62, %v1550_v58 }
 0x3e2   :  { %v2255_v1 = vpop.f32.mrf.mxu0  ;;  %v2296_v57 = vpop.f32.mrf.mxu1 }
 0x3e3   :  { %v2383_v2 = vmul.f32 0.5, %v2254_v63  ;;  %v2385_v3 = vmul.f32 0.5, %v2295_v0  ;;  %v2256_v4 = vadd.f32 %v2255_v1, %v1546_v59  ;;  %v2297_v5 = vadd.f32 %v2296_v57, %v1554_v60 }
 0x3e4   :  { %v2257_v6 = vpop.f32.mrf.mxu0  ;;  %v2298_v7 = vpop.f32.mrf.mxu1 }
 0x3e5   :  { %3048 = vtanh.f32 %v2383_v2  ;;  %v2384_v8 = vmul.f32 0.5, %v2256_v4  ;;  %v2386_v9 = vmul.f32 0.5, %v2297_v5 }
 0x3e6   :  { %3050 = vtanh.f32 %v2385_v3  ;;  %v2258_v50 = vpop.f32.mrf.mxu0  ;;  %v2299_v10 = vpop.f32.mrf.mxu1 }
 0x3e7   :  { %3052 = vtanh.f32 %v2384_v8 }
 0x3e8   :  { %3054 = vtanh.f32 %v2386_v9 }
 0x3f2   :  { %v3049_v52 = vpop.eup %3048 }
 0x3f3   :  { %v3051_v11 = vpop.eup %3050  ;;  %v2399_v12 = vmul.f32 0.5, %v3049_v52 }
 0x3f4   :  { %v3053_v13 = vpop.eup %3052  ;;  %v2401_v14 = vmul.f32 0.5, %v3051_v11 }
 0x3f5   :  { %v3055_v15 = vpop.eup %3054  ;;  %v2400_v16 = vmul.f32 0.5, %v3053_v13  ;;  %v2407_v19 = vadd.f32 0.5, %v2399_v12 }
 0x3f6   :  { %v2402_v17 = vmul.f32 0.5, %v3055_v15  ;;  %v2409_v22 = vadd.f32 0.5, %v2401_v14 }
 0x3f7   :  { %v2408_v20 = vadd.f32 0.5, %v2400_v16 }
 0x3f8   :  { %v2410_v23 = vadd.f32 0.5, %v2402_v17 }
 0x3f9   :  { %v2769_v25 = vpack.c.bf16 %v2408_v20, %v2407_v19 }
 0x3fa   :  { %v2770_v26 = vpack.c.bf16 %v2410_v23, %v2409_v22 }
 0x3fb   :  { %2447 = vst [vmem:[#allocation11] sm:$0xff] %v2769_v25 }
 0x3fc   :  { %2448 = vst [vmem:[#allocation11 + $0x8] sm:$0xff] %v2770_v26 }
 0x420   :  { %v2335_v35 = vpop.f32.mrf.mxu0  ;;  %v2376_v36 = vpop.f32.mrf.mxu1 }
 0x421   :  { %v2336_v37 = vadd.f32 %v2335_v35, %v1558_v31  ;;  %v2377_v38 = vadd.f32 %v2376_v36, %v1566_v32 }
 0x422   :  { %v2337_v39 = vpop.f32.mrf.mxu0  ;;  %v2378_v40 = vpop.f32.mrf.mxu1 }
 0x423   :  { %v2387_v41 = vmul.f32 0.5, %v2336_v37  ;;  %v2389_v42 = vmul.f32 0.5, %v2377_v38  ;;  %v2338_v18 = vadd.f32 %v2337_v39, %v1562_v33  ;;  %v2379_v21 = vadd.f32 %v2378_v40, %v1570_v34 }
 0x424   :  { %v2339_v24 = vpop.f32.mrf.mxu0  ;;  %v2380_v43 = vpop.f32.mrf.mxu1 }
 0x425   :  { %3056 = vtanh.f32 %v2387_v41  ;;  %v2388_v44 = vmul.f32 0.5, %v2338_v18  ;;  %v2390_v45 = vmul.f32 0.5, %v2379_v21 }
 0x426   :  { %3058 = vtanh.f32 %v2389_v42  ;;  %v2340_v49 = vpop.f32.mrf.mxu0  ;;  %v2381_v46 = vpop.f32.mrf.mxu1 }
 0x427   :  { %3060 = vtanh.f32 %v2388_v44 }
 0x428   :  { %3062 = vtanh.f32 %v2390_v45 }
 0x432   :  { %v3057_v47 = vpop.eup %3056 }
 0x433   :  { %v3059_v48 = vpop.eup %3058  ;;  %v2403_v51 = vmul.f32 0.5, %v3057_v47 }
 0x434   :  { %v3061_v53 = vpop.eup %3060  ;;  %v2405_v54 = vmul.f32 0.5, %v3059_v48 }
 0x435   :  { %v3063_v55 = vpop.eup %3062  ;;  %v2404_v56 = vmul.f32 0.5, %v3061_v53  ;;  %v2411_v59 = vadd.f32 0.5, %v2403_v51 }
 0x436   :  { %v2406_v58 = vmul.f32 0.5, %v3063_v55  ;;  %v2413_v61 = vadd.f32 0.5, %v2405_v54 }
 0x437   :  { %v2412_v60 = vadd.f32 0.5, %v2404_v56 }
 0x438   :  { %v2414_v62 = vadd.f32 0.5, %v2406_v58 }
 0x439   :  { %v2771_v63 = vpack.c.bf16 %v2412_v60, %v2411_v59 }
 0x43a   :  { %v2772_v0 = vpack.c.bf16 %v2414_v62, %v2413_v61 }
 0x43b   :  { %2449 = vst [vmem:[#allocation11 + $0x10] sm:$0xff] %v2771_v63 }
 0x43c   :  { %2450 = vst [vmem:[#allocation11 + $0x18] sm:$0xff] %v2772_v0 }
 0x43d   :  { %3175 = shalt.err (!%p3172_p1)
}
 0x43e   :  { %2460 = dma.vmem_to_hbm [thread:$0]  %s2458_s19, 512, %s3343_s9, [#allocation4]  }
 0x43f   :  { %3190 = dma.done.wait [#allocation4], 512  }
 0x440   :  { %3191 = vsyncadd [#allocation4], 4294966784 }
 0x441   :  { %2464 = vsyncpa [#allocation3], 1 }
 0x442   :  { %2465 = vsyncpa [#allocation6], 1 }
 0x443   :  { %2466 = vsyncpa [#allocation9], 1 }
 0x444   :  { %2467 = vsyncpa [#allocation4], 1 }

</bundles_post_ra>
